<compile_context>
chip_gen: v5e
topology: v5e:2x2
jax: 0.10.0
libtpu: 0.0.40
codegen_flags: <defaults>
</compile_context>

<pallas_src>
import math
import functools

import jax
import jax.numpy as jnp
from jax.experimental import pallas as pl
from jax.experimental.pallas import tpu as pltpu


def _mhsa_kernel(q_ref, k_ref, v_ref, w_ref, b_ref, out_ref, acc_ref, *,
                 num_heads, d_k):
    # Block views: q/k/v/out are (Bt, L, D); w is (D, 3D) pre-transposed fused
    # projection weights; b is (1, 3D) fused bias; acc is (Bt, L, D) f32 scratch.
    bt, L, D = q_ref.shape

    scale = 1.0 / math.sqrt(d_k)
    inv_t = jnp.float32(100.0)          # 1 / t, t = 0.01 (temperature softmax)
    thr = jnp.float32(0.019)

    w = w_ref[...]                      # (D, 3D)
    b = b_ref[...]                      # (1, 3D)

    def project(x_ref, lo):
        """x @ W_slice + b_slice -> (Bt, L, D); W was pre-transposed outside."""
        wj = w[:, lo:lo + D]
        bj = b[:, lo:lo + D]
        if bt == 1 or L % 8 == 0:
            # (bt, L) merge is layout-free here (no sublane-tile crossing).
            x2 = x_ref[...].reshape(bt * L, D)
            y = jnp.dot(x2, wj, preferred_element_type=jnp.float32) + bj
            return y.reshape(bt, L, D)
        # L not sublane-aligned and bt > 1: per-batch-row 2D dots avoid a
        # relayout copy of the merged operand.
        rows = [jnp.dot(x_ref[i], wj, preferred_element_type=jnp.float32) + bj
                for i in range(bt)]
        return jnp.stack(rows, axis=0)

    qp = project(q_ref, 0)
    kp = project(k_ref, D)
    vp = project(v_ref, 2 * D)

    # Static head loop; each iteration sinks into a scratch store so its (L,L)
    # temporaries die at the end of the iteration.
    for h in range(num_heads):
        lo = h * d_k
        # Fold 1/sqrt(d_k) into qh (L*d_k elements instead of L*L scores).
        qh = qp[:, :, lo:lo + d_k] * scale          # (Bt, L, d_k)
        kh = kp[:, :, lo:lo + d_k]
        vh = vp[:, :, lo:lo + d_k]

        # Scores: contract last axes of both operands -> no kh.T transpose.
        scores = jnp.einsum('bqd,bkd->bqk', qh, kh,
                            preferred_element_type=jnp.float32)   # (Bt, L, L)

        # One row max, reused by both softmaxes (any surviving score is within
        # ~log(1/0.019)/100 ~= 0.04 of the max, so the shift is safe).
        m = jnp.max(scores, axis=-1, keepdims=True)
        shifted = scores - m

        # Temperature softmax is only needed for the sparsity mask; skip its
        # normalization:  attn1 >= 0.019  <=>  e1 >= 0.019 * sum(e1).
        e1 = jnp.exp(shifted * inv_t)
        keep = e1 >= thr * jnp.sum(e1, axis=-1, keepdims=True)

        # Masked softmax on the ORIGINAL scaled scores (masked entries -> 0,
        # exactly matching exp(-1e9 - m) underflow in the reference).
        e2 = jnp.where(keep, jnp.exp(shifted), 0.0)
        denom = jnp.sum(e2, axis=-1, keepdims=True)
        if L > 52:
            # All-masked rows are only possible when L > 1/0.019; match the
            # reference (softmax over all -1e9 -> uniform) instead of 0/0 NaN.
            dead = denom == 0.0
            e2 = jnp.where(dead, 1.0, e2)
            denom = jnp.where(dead, jnp.float32(L), denom)
        attn2 = e2 * pl.reciprocal(denom, approx=True)   # EUP slot, not VALU

        # Context for this head, staged into the full-width VMEM scratch.
        ctx = jnp.einsum('bqk,bkd->bqd', attn2, vh,
                         preferred_element_type=jnp.float32)      # (Bt, L, d_k)
        acc_ref[:, :, lo:lo + d_k] = ctx

    # Single lane-dense store on the output pipeline path.
    out_ref[...] = acc_ref[...].astype(out_ref.dtype)


def _vmem_budget():
    """(vmem_limit_bytes, tiling_budget_bytes), derived from the chip."""
    try:
        cap = getattr(pltpu.get_tpu_info(), "vmem_capacity_bytes", None)
    except Exception:
        cap = None
    if not cap:
        cap = 64 * 1024 * 1024                 # conservative: v7x per-TC VMEM
    limit = min((cap * 3) // 4, 100 * 1024 * 1024)   # ~48 MiB v7x, ~96 MiB v5e/v6e
    budget = max(limit - 12 * 1024 * 1024, 8 * 1024 * 1024)  # compiler headroom
    return int(limit), int(budget)


def _pick_batch_block(B, L, D, num_heads, budget_bytes):
    """Largest divisor of B (capped so grid >= 2 when B >= 2) fitting the budget."""
    cap = max(1, B // 2)        # >= 2 grid steps: megacore sharding + pipelining
    for bt in range(cap, 0, -1):
        if B % bt:
            continue
        io_blocks = 2 * 4 * bt * L * D * 4       # Q,K,V,out blocks, double-buffered f32
        weights = (D * 3 * D + 3 * D) * 4        # fused W^T + bias, single-buffered
        proj_acc = 4 * bt * L * D * 4            # qp/kp/vp values + acc scratch
        # Unrolled head loop: conservatively assume up to 2 heads' (L,L) temps live.
        interm = min(2, num_heads) * 4 * bt * L * L * 4
        if io_blocks + weights + proj_acc + interm <= budget_bytes:
            return bt
    return 1


def multi_head_self_attention(user_ID, Q, K, V, params, *, num_heads):
    """Pallas-backed equivalent of MultiHeadSelfAttention.forward."""
    del user_ID  # unused by the reference forward pass
    if V is None:
        V = K
    B, L, D = Q.shape
    assert D % num_heads == 0
    d_k = D // num_heads

    Wq, bq, Wk, bk, Wv, bv = params
    # Pre-transpose + fuse the three projection weights: one (D, 3D) slab and
    # one (1, 3D) bias -> single weight DMA, no in-kernel transpose.
    w_fused = jnp.concatenate([Wq.T, Wk.T, Wv.T], axis=1)        # (D, 3D)
    b_fused = jnp.concatenate([bq, bk, bv]).reshape(1, 3 * D)    # (1, 3D)

    vmem_limit, budget = _vmem_budget()
    block_b = _pick_batch_block(B, L, D, num_heads, budget)
    grid = (B // block_b,)

    kernel = functools.partial(_mhsa_kernel, num_heads=num_heads, d_k=d_k)

    def call(single_buffer_weights):
        if single_buffer_weights:
            w_spec = pl.BlockSpec((D, 3 * D), lambda i: (0, 0),
                                  pipeline_mode=pl.Buffered(1))
            b_spec = pl.BlockSpec((1, 3 * D), lambda i: (0, 0),
                                  pipeline_mode=pl.Buffered(1))
        else:
            w_spec = pl.BlockSpec((D, 3 * D), lambda i: (0, 0))
            b_spec = pl.BlockSpec((1, 3 * D), lambda i: (0, 0))

        return pl.pallas_call(
            kernel,
            out_shape=jax.ShapeDtypeStruct((B, L, D), Q.dtype),
            grid_spec=pltpu.PrefetchScalarGridSpec(
                num_scalar_prefetch=0,
                grid=grid,
                in_specs=[
                    pl.BlockSpec((block_b, L, D), lambda i: (i, 0, 0)),  # Q
                    pl.BlockSpec((block_b, L, D), lambda i: (i, 0, 0)),  # K
                    pl.BlockSpec((block_b, L, D), lambda i: (i, 0, 0)),  # V
                    w_spec,                                              # fused W^T
                    b_spec,                                              # fused bias
                ],
                out_specs=pl.BlockSpec((block_b, L, D), lambda i: (i, 0, 0)),
                scratch_shapes=[pltpu.VMEM((block_b, L, D), jnp.float32)],
            ),
            compiler_params=pltpu.CompilerParams(
                dimension_semantics=("parallel",),
                vmem_limit_bytes=vmem_limit,
            ),
        )(Q, K, V, w_fused, b_fused)

    try:
        return call(True)
    except Exception:
        # Portability fallback: some Pallas versions may reject pl.Buffered(1)
        # on the main pipeline; retry with default double-buffered weights.
        return call(False)


def init_params(key, d_model):
    """Deterministic xavier_uniform weights (gain=1) + uniform biases."""
    ks = jax.random.split(key, 6)
    bound_w = math.sqrt(6.0 / (d_model + d_model))   # xavier_uniform
    bound_b = 1.0 / math.sqrt(d_model)               # PyTorch Linear bias default
    Wq = jax.random.uniform(ks[0], (d_model, d_model), jnp.float32, -bound_w, bound_w)
    Wk = jax.random.uniform(ks[1], (d_model, d_model), jnp.float32, -bound_w, bound_w)
    Wv = jax.random.uniform(ks[2], (d_model, d_model), jnp.float32, -bound_w, bound_w)
    bq = jax.random.uniform(ks[3], (d_model,), jnp.float32, -bound_b, bound_b)
    bk = jax.random.uniform(ks[4], (d_model,), jnp.float32, -bound_b, bound_b)
    bv = jax.random.uniform(ks[5], (d_model,), jnp.float32, -bound_b, bound_b)
    return (Wq, bq, Wk, bk, Wv, bv)


def reference_forward(Q, K, V, params, num_heads):
    """Pure-JAX reference mirroring the PyTorch forward."""
    Wq, bq, Wk, bk, Wv, bv = params
    B, L, D = Q.shape
    d_k = D // num_heads
    qp = Q @ Wq.T + bq
    kp = K @ Wk.T + bk
    vp = V @ Wv.T + bv
    q_s = qp.reshape(B, L, num_heads, d_k).transpose(0, 2, 1, 3)
    k_s = kp.reshape(B, L, num_heads, d_k).transpose(0, 2, 1, 3)
    v_s = vp.reshape(B, L, num_heads, d_k).transpose(0, 2, 1, 3)
    scores = jnp.einsum("bhqd,bhkd->bhqk", q_s, k_s) / math.sqrt(d_k)
    attn = jax.nn.softmax(scores / 0.01, axis=-1)
    scores = jnp.where(attn < 0.019, -1.0e9, scores)
    attn = jax.nn.softmax(scores, axis=-1)
    ctx = jnp.einsum("bhqk,bhkd->bhqd", attn, v_s)
    return ctx.transpose(0, 2, 1, 3).reshape(B, L, D)


if __name__ == "__main__":
    batch, seq, d_model, num_heads = 2, 8, 32, 4

    key = jax.random.PRNGKey(0)
    k_param, k_q, k_k = jax.random.split(key, 3)
    params = init_params(k_param, d_model)

    Q = jax.random.normal(k_q, (batch, seq, d_model), jnp.float32)
    K = jax.random.normal(k_k, (batch, seq, d_model), jnp.float32)
    user_ID = jnp.arange(batch, dtype=jnp.int32)   # unused, mirrors the signature

    out = multi_head_self_attention(user_ID, Q, K, None, params,
                                    num_heads=num_heads)
    out = jax.block_until_ready(out)

    ref = reference_forward(Q, K, K, params, num_heads)
    assert out.shape == (batch, seq, d_model)
    assert jnp.allclose(out, ref, rtol=2e-3, atol=2e-3), "mismatch vs reference"

    print("KERNEL_OK")
</pallas_src>

<mosaic_0001>
module attributes {stable_mosaic.version = 11 : i64} {
  func.func @_mhsa_kernel(%arg0: i32, %arg1: memref<1x8x32xf32, #tpu.memory_space<vmem>>, %arg2: memref<1x8x32xf32, #tpu.memory_space<vmem>>, %arg3: memref<1x8x32xf32, #tpu.memory_space<vmem>>, %arg4: memref<32x96xf32, #tpu.memory_space<vmem>>, %arg5: memref<1x96xf32, #tpu.memory_space<vmem>>, %arg6: memref<1x8x32xf32, #tpu.memory_space<vmem>>, %arg7: memref<1x8x32xf32, #tpu.memory_space<vmem>>) attributes {dimension_semantics = [#tpu.dimension_semantics<parallel>], iteration_bounds = array<i64: 2>, scalar_prefetch = 0 : i64, scratch_operands = 1 : i64, tpu.core_type = #tpu.core_type<tc>, window_params = [{transform_indices = @transform_0, window_bounds = array<i64: 1, 8, 32>}, {transform_indices = @transform_1, window_bounds = array<i64: 1, 8, 32>}, {transform_indices = @transform_2, window_bounds = array<i64: 1, 8, 32>}, {pipeline_mode = #tpu.pipeline_mode<synchronous>, transform_indices = @transform_3, window_bounds = array<i64: 32, 96>}, {pipeline_mode = #tpu.pipeline_mode<synchronous>, transform_indices = @transform_4, window_bounds = array<i64: 1, 96>}, {transform_indices = @transform_5, window_bounds = array<i64: 1, 8, 32>}]} {
    %c0 = arith.constant 0 : index
    %c0_0 = arith.constant 0 : index
    %0 = vector.load %arg4[%c0, %c0_0] : memref<32x96xf32, #tpu.memory_space<vmem>>, vector<32x96xf32>
    %c0_1 = arith.constant 0 : index
    %c0_2 = arith.constant 0 : index
    %1 = vector.load %arg5[%c0_1, %c0_2] : memref<1x96xf32, #tpu.memory_space<vmem>>, vector<1x96xf32>
    %2 = vector.extract_strided_slice %0 {offsets = [0, 0], sizes = [32, 32], strides = [1, 1]} : vector<32x96xf32> to vector<32x32xf32>
    %3 = vector.extract_strided_slice %1 {offsets = [0, 0], sizes = [1, 32], strides = [1, 1]} : vector<1x96xf32> to vector<1x32xf32>
    %c0_3 = arith.constant 0 : index
    %c0_4 = arith.constant 0 : index
    %c0_5 = arith.constant 0 : index
    %4 = vector.load %arg1[%c0_3, %c0_4, %c0_5] : memref<1x8x32xf32, #tpu.memory_space<vmem>>, vector<1x8x32xf32>
    %5 = vector.shape_cast %4 : vector<1x8x32xf32> to vector<8x32xf32>
    %cst = arith.constant dense<0.000000e+00> : vector<8x32xf32>
    %6 = tpu.matmul %5, %2, %cst {dimension_numbers = #tpu.dot_dimension_numbers<[1], [0], [0], [1], [0, 0, 1, 1], [], []>} : vector<8x32xf32>, vector<32x32xf32>, vector<8x32xf32> -> vector<8x32xf32>
    %7 = vector.broadcast %3 : vector<1x32xf32> to vector<8x32xf32>
    %8 = arith.addf %6, %7 : vector<8x32xf32>
    %9 = vector.shape_cast %8 : vector<8x32xf32> to vector<1x8x32xf32>
    %10 = vector.extract_strided_slice %0 {offsets = [0, 32], sizes = [32, 32], strides = [1, 1]} : vector<32x96xf32> to vector<32x32xf32>
    %11 = vector.extract_strided_slice %1 {offsets = [0, 32], sizes = [1, 32], strides = [1, 1]} : vector<1x96xf32> to vector<1x32xf32>
    %c0_6 = arith.constant 0 : index
    %c0_7 = arith.constant 0 : index
    %c0_8 = arith.constant 0 : index
    %12 = vector.load %arg2[%c0_6, %c0_7, %c0_8] : memref<1x8x32xf32, #tpu.memory_space<vmem>>, vector<1x8x32xf32>
    %13 = vector.shape_cast %12 : vector<1x8x32xf32> to vector<8x32xf32>
    %cst_9 = arith.constant dense<0.000000e+00> : vector<8x32xf32>
    %14 = tpu.matmul %13, %10, %cst_9 {dimension_numbers = #tpu.dot_dimension_numbers<[1], [0], [0], [1], [0, 0, 1, 1], [], []>} : vector<8x32xf32>, vector<32x32xf32>, vector<8x32xf32> -> vector<8x32xf32>
    %15 = vector.broadcast %11 : vector<1x32xf32> to vector<8x32xf32>
    %16 = arith.addf %14, %15 : vector<8x32xf32>
    %17 = vector.shape_cast %16 : vector<8x32xf32> to vector<1x8x32xf32>
    %18 = vector.extract_strided_slice %0 {offsets = [0, 64], sizes = [32, 32], strides = [1, 1]} : vector<32x96xf32> to vector<32x32xf32>
    %19 = vector.extract_strided_slice %1 {offsets = [0, 64], sizes = [1, 32], strides = [1, 1]} : vector<1x96xf32> to vector<1x32xf32>
    %c0_10 = arith.constant 0 : index
    %c0_11 = arith.constant 0 : index
    %c0_12 = arith.constant 0 : index
    %20 = vector.load %arg3[%c0_10, %c0_11, %c0_12] : memref<1x8x32xf32, #tpu.memory_space<vmem>>, vector<1x8x32xf32>
    %21 = vector.shape_cast %20 : vector<1x8x32xf32> to vector<8x32xf32>
    %cst_13 = arith.constant dense<0.000000e+00> : vector<8x32xf32>
    %22 = tpu.matmul %21, %18, %cst_13 {dimension_numbers = #tpu.dot_dimension_numbers<[1], [0], [0], [1], [0, 0, 1, 1], [], []>} : vector<8x32xf32>, vector<32x32xf32>, vector<8x32xf32> -> vector<8x32xf32>
    %23 = vector.broadcast %19 : vector<1x32xf32> to vector<8x32xf32>
    %24 = arith.addf %22, %23 : vector<8x32xf32>
    %25 = vector.shape_cast %24 : vector<8x32xf32> to vector<1x8x32xf32>
    %26 = vector.extract_strided_slice %9 {offsets = [0, 0, 0], sizes = [1, 8, 8], strides = [1, 1, 1]} : vector<1x8x32xf32> to vector<1x8x8xf32>
    %cst_14 = arith.constant 0.353553385 : f32
    %27 = vector.broadcast %cst_14 : f32 to vector<1x8x8xf32>
    %28 = arith.mulf %26, %27 : vector<1x8x8xf32>
    %29 = vector.extract_strided_slice %17 {offsets = [0, 0, 0], sizes = [1, 8, 8], strides = [1, 1, 1]} : vector<1x8x32xf32> to vector<1x8x8xf32>
    %30 = vector.extract_strided_slice %25 {offsets = [0, 0, 0], sizes = [1, 8, 8], strides = [1, 1, 1]} : vector<1x8x32xf32> to vector<1x8x8xf32>
    "tpu.trace_start"() <{level = 10 : i32, message = "bqd,bkd->bqk"}> : () -> ()
    %cst_15 = arith.constant dense<0.000000e+00> : vector<1x8x8xf32>
    %31 = tpu.matmul %28, %29, %cst_15 {dimension_numbers = #tpu.dot_dimension_numbers<[2], [2], [1], [1], [0, 0, 0, 1, 1, 1], [0], [0]>} : vector<1x8x8xf32>, vector<1x8x8xf32>, vector<1x8x8xf32> -> vector<1x8x8xf32>
    "tpu.trace_stop"() : () -> ()
    %cst_16 = arith.constant dense<0xFF800000> : vector<1x8xf32>
    %32 = vector.multi_reduction <maximumf>, %31, %cst_16 [2] : vector<1x8x8xf32> to vector<1x8xf32>
    %33 = vector.shape_cast %32 : vector<1x8xf32> to vector<1x8x1xf32>
    %34 = vector.broadcast %33 : vector<1x8x1xf32> to vector<1x8x8xf32>
    %35 = arith.subf %31, %34 : vector<1x8x8xf32>
    %cst_17 = arith.constant 1.000000e+02 : f32
    %36 = vector.broadcast %cst_17 : f32 to vector<1x8x8xf32>
    %37 = arith.mulf %35, %36 : vector<1x8x8xf32>
    %38 = math.exp %37 : vector<1x8x8xf32>
    %cst_18 = arith.constant dense<0.000000e+00> : vector<1x8xf32>
    %39 = vector.multi_reduction <add>, %38, %cst_18 [2] : vector<1x8x8xf32> to vector<1x8xf32>
    %40 = vector.shape_cast %39 : vector<1x8xf32> to vector<1x8x1xf32>
    %cst_19 = arith.constant 1.900000e-02 : f32
    %41 = vector.broadcast %cst_19 : f32 to vector<1x8x1xf32>
    %42 = arith.mulf %41, %40 : vector<1x8x1xf32>
    %43 = vector.broadcast %42 : vector<1x8x1xf32> to vector<1x8x8xf32>
    %44 = arith.cmpf oge, %38, %43 : vector<1x8x8xf32>
    %45 = math.exp %35 : vector<1x8x8xf32>
    %cst_20 = arith.constant 0.000000e+00 : f32
    %46 = vector.broadcast %cst_20 : f32 to vector<1x8x8xf32>
    %47 = arith.select %44, %45, %46 : vector<1x8x8xi1>, vector<1x8x8xf32>
    %cst_21 = arith.constant dense<0.000000e+00> : vector<1x8xf32>
    %48 = vector.multi_reduction <add>, %47, %cst_21 [2] : vector<1x8x8xf32> to vector<1x8xf32>
    %49 = vector.shape_cast %48 : vector<1x8xf32> to vector<1x8x1xf32>
    %50 = tpu.reciprocal %49 {approx = true} : vector<1x8x1xf32> -> vector<1x8x1xf32>
    %51 = vector.broadcast %50 : vector<1x8x1xf32> to vector<1x8x8xf32>
    %52 = arith.mulf %47, %51 : vector<1x8x8xf32>
    "tpu.trace_start"() <{level = 10 : i32, message = "bqk,bkd->bqd"}> : () -> ()
    %cst_22 = arith.constant dense<0.000000e+00> : vector<1x8x8xf32>
    %53 = tpu.matmul %52, %30, %cst_22 {dimension_numbers = #tpu.dot_dimension_numbers<[2], [1], [1], [2], [0, 0, 0, 1, 1, 2], [0], [0]>} : vector<1x8x8xf32>, vector<1x8x8xf32>, vector<1x8x8xf32> -> vector<1x8x8xf32>
    "tpu.trace_stop"() : () -> ()
    %c0_23 = arith.constant 0 : index
    %c0_24 = arith.constant 0 : index
    %c0_25 = arith.constant 0 : index
    %54 = vector.load %arg7[%c0_23, %c0_24, %c0_25] : memref<1x8x32xf32, #tpu.memory_space<vmem>>, vector<1x8x8xf32>
    tpu.vector_store %arg7[%c0_23, %c0_24, %c0_25], %53 {strides = array<i32>} : memref<1x8x32xf32, #tpu.memory_space<vmem>>, vector<1x8x8xf32>,
    %55 = vector.extract_strided_slice %9 {offsets = [0, 0, 8], sizes = [1, 8, 8], strides = [1, 1, 1]} : vector<1x8x32xf32> to vector<1x8x8xf32>
    %cst_26 = arith.constant 0.353553385 : f32
    %56 = vector.broadcast %cst_26 : f32 to vector<1x8x8xf32>
    %57 = arith.mulf %55, %56 : vector<1x8x8xf32>
    %58 = vector.extract_strided_slice %17 {offsets = [0, 0, 8], sizes = [1, 8, 8], strides = [1, 1, 1]} : vector<1x8x32xf32> to vector<1x8x8xf32>
    %59 = vector.extract_strided_slice %25 {offsets = [0, 0, 8], sizes = [1, 8, 8], strides = [1, 1, 1]} : vector<1x8x32xf32> to vector<1x8x8xf32>
    "tpu.trace_start"() <{level = 10 : i32, message = "bqd,bkd->bqk"}> : () -> ()
    %cst_27 = arith.constant dense<0.000000e+00> : vector<1x8x8xf32>
    %60 = tpu.matmul %57, %58, %cst_27 {dimension_numbers = #tpu.dot_dimension_numbers<[2], [2], [1], [1], [0, 0, 0, 1, 1, 1], [0], [0]>} : vector<1x8x8xf32>, vector<1x8x8xf32>, vector<1x8x8xf32> -> vector<1x8x8xf32>
    "tpu.trace_stop"() : () -> ()
    %cst_28 = arith.constant dense<0xFF800000> : vector<1x8xf32>
    %61 = vector.multi_reduction <maximumf>, %60, %cst_28 [2] : vector<1x8x8xf32> to vector<1x8xf32>
    %62 = vector.shape_cast %61 : vector<1x8xf32> to vector<1x8x1xf32>
    %63 = vector.broadcast %62 : vector<1x8x1xf32> to vector<1x8x8xf32>
    %64 = arith.subf %60, %63 : vector<1x8x8xf32>
    %cst_29 = arith.constant 1.000000e+02 : f32
    %65 = vector.broadcast %cst_29 : f32 to vector<1x8x8xf32>
    %66 = arith.mulf %64, %65 : vector<1x8x8xf32>
    %67 = math.exp %66 : vector<1x8x8xf32>
    %cst_30 = arith.constant dense<0.000000e+00> : vector<1x8xf32>
    %68 = vector.multi_reduction <add>, %67, %cst_30 [2] : vector<1x8x8xf32> to vector<1x8xf32>
    %69 = vector.shape_cast %68 : vector<1x8xf32> to vector<1x8x1xf32>
    %cst_31 = arith.constant 1.900000e-02 : f32
    %70 = vector.broadcast %cst_31 : f32 to vector<1x8x1xf32>
    %71 = arith.mulf %70, %69 : vector<1x8x1xf32>
    %72 = vector.broadcast %71 : vector<1x8x1xf32> to vector<1x8x8xf32>
    %73 = arith.cmpf oge, %67, %72 : vector<1x8x8xf32>
    %74 = math.exp %64 : vector<1x8x8xf32>
    %cst_32 = arith.constant 0.000000e+00 : f32
    %75 = vector.broadcast %cst_32 : f32 to vector<1x8x8xf32>
    %76 = arith.select %73, %74, %75 : vector<1x8x8xi1>, vector<1x8x8xf32>
    %cst_33 = arith.constant dense<0.000000e+00> : vector<1x8xf32>
    %77 = vector.multi_reduction <add>, %76, %cst_33 [2] : vector<1x8x8xf32> to vector<1x8xf32>
    %78 = vector.shape_cast %77 : vector<1x8xf32> to vector<1x8x1xf32>
    %79 = tpu.reciprocal %78 {approx = true} : vector<1x8x1xf32> -> vector<1x8x1xf32>
    %80 = vector.broadcast %79 : vector<1x8x1xf32> to vector<1x8x8xf32>
    %81 = arith.mulf %76, %80 : vector<1x8x8xf32>
    "tpu.trace_start"() <{level = 10 : i32, message = "bqk,bkd->bqd"}> : () -> ()
    %cst_34 = arith.constant dense<0.000000e+00> : vector<1x8x8xf32>
    %82 = tpu.matmul %81, %59, %cst_34 {dimension_numbers = #tpu.dot_dimension_numbers<[2], [1], [1], [2], [0, 0, 0, 1, 1, 2], [0], [0]>} : vector<1x8x8xf32>, vector<1x8x8xf32>, vector<1x8x8xf32> -> vector<1x8x8xf32>
    "tpu.trace_stop"() : () -> ()
    %c0_35 = arith.constant 0 : index
    %c0_36 = arith.constant 0 : index
    %c8 = arith.constant 8 : index
    %83 = vector.load %arg7[%c0_35, %c0_36, %c8] : memref<1x8x32xf32, #tpu.memory_space<vmem>>, vector<1x8x8xf32>
    tpu.vector_store %arg7[%c0_35, %c0_36, %c8], %82 {strides = array<i32>} : memref<1x8x32xf32, #tpu.memory_space<vmem>>, vector<1x8x8xf32>,
    %84 = vector.extract_strided_slice %9 {offsets = [0, 0, 16], sizes = [1, 8, 8], strides = [1, 1, 1]} : vector<1x8x32xf32> to vector<1x8x8xf32>
    %cst_37 = arith.constant 0.353553385 : f32
    %85 = vector.broadcast %cst_37 : f32 to vector<1x8x8xf32>
    %86 = arith.mulf %84, %85 : vector<1x8x8xf32>
    %87 = vector.extract_strided_slice %17 {offsets = [0, 0, 16], sizes = [1, 8, 8], strides = [1, 1, 1]} : vector<1x8x32xf32> to vector<1x8x8xf32>
    %88 = vector.extract_strided_slice %25 {offsets = [0, 0, 16], sizes = [1, 8, 8], strides = [1, 1, 1]} : vector<1x8x32xf32> to vector<1x8x8xf32>
    "tpu.trace_start"() <{level = 10 : i32, message = "bqd,bkd->bqk"}> : () -> ()
    %cst_38 = arith.constant dense<0.000000e+00> : vector<1x8x8xf32>
    %89 = tpu.matmul %86, %87, %cst_38 {dimension_numbers = #tpu.dot_dimension_numbers<[2], [2], [1], [1], [0, 0, 0, 1, 1, 1], [0], [0]>} : vector<1x8x8xf32>, vector<1x8x8xf32>, vector<1x8x8xf32> -> vector<1x8x8xf32>
    "tpu.trace_stop"() : () -> ()
    %cst_39 = arith.constant dense<0xFF800000> : vector<1x8xf32>
    %90 = vector.multi_reduction <maximumf>, %89, %cst_39 [2] : vector<1x8x8xf32> to vector<1x8xf32>
    %91 = vector.shape_cast %90 : vector<1x8xf32> to vector<1x8x1xf32>
    %92 = vector.broadcast %91 : vector<1x8x1xf32> to vector<1x8x8xf32>
    %93 = arith.subf %89, %92 : vector<1x8x8xf32>
    %cst_40 = arith.constant 1.000000e+02 : f32
    %94 = vector.broadcast %cst_40 : f32 to vector<1x8x8xf32>
    %95 = arith.mulf %93, %94 : vector<1x8x8xf32>
    %96 = math.exp %95 : vector<1x8x8xf32>
    %cst_41 = arith.constant dense<0.000000e+00> : vector<1x8xf32>
    %97 = vector.multi_reduction <add>, %96, %cst_41 [2] : vector<1x8x8xf32> to vector<1x8xf32>
    %98 = vector.shape_cast %97 : vector<1x8xf32> to vector<1x8x1xf32>
    %cst_42 = arith.constant 1.900000e-02 : f32
    %99 = vector.broadcast %cst_42 : f32 to vector<1x8x1xf32>
    %100 = arith.mulf %99, %98 : vector<1x8x1xf32>
    %101 = vector.broadcast %100 : vector<1x8x1xf32> to vector<1x8x8xf32>
    %102 = arith.cmpf oge, %96, %101 : vector<1x8x8xf32>
    %103 = math.exp %93 : vector<1x8x8xf32>
    %cst_43 = arith.constant 0.000000e+00 : f32
    %104 = vector.broadcast %cst_43 : f32 to vector<1x8x8xf32>
    %105 = arith.select %102, %103, %104 : vector<1x8x8xi1>, vector<1x8x8xf32>
    %cst_44 = arith.constant dense<0.000000e+00> : vector<1x8xf32>
    %106 = vector.multi_reduction <add>, %105, %cst_44 [2] : vector<1x8x8xf32> to vector<1x8xf32>
    %107 = vector.shape_cast %106 : vector<1x8xf32> to vector<1x8x1xf32>
    %108 = tpu.reciprocal %107 {approx = true} : vector<1x8x1xf32> -> vector<1x8x1xf32>
    %109 = vector.broadcast %108 : vector<1x8x1xf32> to vector<1x8x8xf32>
    %110 = arith.mulf %105, %109 : vector<1x8x8xf32>
    "tpu.trace_start"() <{level = 10 : i32, message = "bqk,bkd->bqd"}> : () -> ()
    %cst_45 = arith.constant dense<0.000000e+00> : vector<1x8x8xf32>
    %111 = tpu.matmul %110, %88, %cst_45 {dimension_numbers = #tpu.dot_dimension_numbers<[2], [1], [1], [2], [0, 0, 0, 1, 1, 2], [0], [0]>} : vector<1x8x8xf32>, vector<1x8x8xf32>, vector<1x8x8xf32> -> vector<1x8x8xf32>
    "tpu.trace_stop"() : () -> ()
    %c0_46 = arith.constant 0 : index
    %c0_47 = arith.constant 0 : index
    %c16 = arith.constant 16 : index
    %112 = vector.load %arg7[%c0_46, %c0_47, %c16] : memref<1x8x32xf32, #tpu.memory_space<vmem>>, vector<1x8x8xf32>
    tpu.vector_store %arg7[%c0_46, %c0_47, %c16], %111 {strides = array<i32>} : memref<1x8x32xf32, #tpu.memory_space<vmem>>, vector<1x8x8xf32>,
    %113 = vector.extract_strided_slice %9 {offsets = [0, 0, 24], sizes = [1, 8, 8], strides = [1, 1, 1]} : vector<1x8x32xf32> to vector<1x8x8xf32>
    %cst_48 = arith.constant 0.353553385 : f32
    %114 = vector.broadcast %cst_48 : f32 to vector<1x8x8xf32>
    %115 = arith.mulf %113, %114 : vector<1x8x8xf32>
    %116 = vector.extract_strided_slice %17 {offsets = [0, 0, 24], sizes = [1, 8, 8], strides = [1, 1, 1]} : vector<1x8x32xf32> to vector<1x8x8xf32>
    %117 = vector.extract_strided_slice %25 {offsets = [0, 0, 24], sizes = [1, 8, 8], strides = [1, 1, 1]} : vector<1x8x32xf32> to vector<1x8x8xf32>
    "tpu.trace_start"() <{level = 10 : i32, message = "bqd,bkd->bqk"}> : () -> ()
    %cst_49 = arith.constant dense<0.000000e+00> : vector<1x8x8xf32>
    %118 = tpu.matmul %115, %116, %cst_49 {dimension_numbers = #tpu.dot_dimension_numbers<[2], [2], [1], [1], [0, 0, 0, 1, 1, 1], [0], [0]>} : vector<1x8x8xf32>, vector<1x8x8xf32>, vector<1x8x8xf32> -> vector<1x8x8xf32>
    "tpu.trace_stop"() : () -> ()
    %cst_50 = arith.constant dense<0xFF800000> : vector<1x8xf32>
    %119 = vector.multi_reduction <maximumf>, %118, %cst_50 [2] : vector<1x8x8xf32> to vector<1x8xf32>
    %120 = vector.shape_cast %119 : vector<1x8xf32> to vector<1x8x1xf32>
    %121 = vector.broadcast %120 : vector<1x8x1xf32> to vector<1x8x8xf32>
    %122 = arith.subf %118, %121 : vector<1x8x8xf32>
    %cst_51 = arith.constant 1.000000e+02 : f32
    %123 = vector.broadcast %cst_51 : f32 to vector<1x8x8xf32>
    %124 = arith.mulf %122, %123 : vector<1x8x8xf32>
    %125 = math.exp %124 : vector<1x8x8xf32>
    %cst_52 = arith.constant dense<0.000000e+00> : vector<1x8xf32>
    %126 = vector.multi_reduction <add>, %125, %cst_52 [2] : vector<1x8x8xf32> to vector<1x8xf32>
    %127 = vector.shape_cast %126 : vector<1x8xf32> to vector<1x8x1xf32>
    %cst_53 = arith.constant 1.900000e-02 : f32
    %128 = vector.broadcast %cst_53 : f32 to vector<1x8x1xf32>
    %129 = arith.mulf %128, %127 : vector<1x8x1xf32>
    %130 = vector.broadcast %129 : vector<1x8x1xf32> to vector<1x8x8xf32>
    %131 = arith.cmpf oge, %125, %130 : vector<1x8x8xf32>
    %132 = math.exp %122 : vector<1x8x8xf32>
    %cst_54 = arith.constant 0.000000e+00 : f32
    %133 = vector.broadcast %cst_54 : f32 to vector<1x8x8xf32>
    %134 = arith.select %131, %132, %133 : vector<1x8x8xi1>, vector<1x8x8xf32>
    %cst_55 = arith.constant dense<0.000000e+00> : vector<1x8xf32>
    %135 = vector.multi_reduction <add>, %134, %cst_55 [2] : vector<1x8x8xf32> to vector<1x8xf32>
    %136 = vector.shape_cast %135 : vector<1x8xf32> to vector<1x8x1xf32>
    %137 = tpu.reciprocal %136 {approx = true} : vector<1x8x1xf32> -> vector<1x8x1xf32>
    %138 = vector.broadcast %137 : vector<1x8x1xf32> to vector<1x8x8xf32>
    %139 = arith.mulf %134, %138 : vector<1x8x8xf32>
    "tpu.trace_start"() <{level = 10 : i32, message = "bqk,bkd->bqd"}> : () -> ()
    %cst_56 = arith.constant dense<0.000000e+00> : vector<1x8x8xf32>
    %140 = tpu.matmul %139, %117, %cst_56 {dimension_numbers = #tpu.dot_dimension_numbers<[2], [1], [1], [2], [0, 0, 0, 1, 1, 2], [0], [0]>} : vector<1x8x8xf32>, vector<1x8x8xf32>, vector<1x8x8xf32> -> vector<1x8x8xf32>
    "tpu.trace_stop"() : () -> ()
    %c0_57 = arith.constant 0 : index
    %c0_58 = arith.constant 0 : index
    %c24 = arith.constant 24 : index
    %141 = vector.load %arg7[%c0_57, %c0_58, %c24] : memref<1x8x32xf32, #tpu.memory_space<vmem>>, vector<1x8x8xf32>
    tpu.vector_store %arg7[%c0_57, %c0_58, %c24], %140 {strides = array<i32>} : memref<1x8x32xf32, #tpu.memory_space<vmem>>, vector<1x8x8xf32>,
    %c0_59 = arith.constant 0 : index
    %c0_60 = arith.constant 0 : index
    %c0_61 = arith.constant 0 : index
    %142 = vector.load %arg7[%c0_59, %c0_60, %c0_61] : memref<1x8x32xf32, #tpu.memory_space<vmem>>, vector<1x8x32xf32>
    %c0_62 = arith.constant 0 : index
    %c0_63 = arith.constant 0 : index
    %c0_64 = arith.constant 0 : index
    %143 = vector.load %arg6[%c0_62, %c0_63, %c0_64] : memref<1x8x32xf32, #tpu.memory_space<vmem>>, vector<1x8x32xf32>
    tpu.vector_store %arg6[%c0_62, %c0_63, %c0_64], %142 {strides = array<i32>} : memref<1x8x32xf32, #tpu.memory_space<vmem>>, vector<1x8x32xf32>,
    return
  }
  func.func @transform_0(%arg0: i32) -> (i32, i32, i32) {
    %c0_i32 = arith.constant 0 : i32
    %c0_i32_0 = arith.constant 0 : i32
    %c0_i32_1 = arith.constant 0 : i32
    return %arg0, %c0_i32, %c0_i32_0 : i32, i32, i32
  }
  func.func @transform_1(%arg0: i32) -> (i32, i32, i32) {
    %c0_i32 = arith.constant 0 : i32
    %c0_i32_0 = arith.constant 0 : i32
    %c0_i32_1 = arith.constant 0 : i32
    return %arg0, %c0_i32, %c0_i32_0 : i32, i32, i32
  }
  func.func @transform_2(%arg0: i32) -> (i32, i32, i32) {
    %c0_i32 = arith.constant 0 : i32
    %c0_i32_0 = arith.constant 0 : i32
    %c0_i32_1 = arith.constant 0 : i32
    return %arg0, %c0_i32, %c0_i32_0 : i32, i32, i32
  }
  func.func @transform_3(%arg0: i32) -> (i32, i32) {
    %c0_i32 = arith.constant 0 : i32
    %c0_i32_0 = arith.constant 0 : i32
    %c0_i32_1 = arith.constant 0 : i32
    return %c0_i32, %c0_i32_0 : i32, i32
  }
  func.func @transform_4(%arg0: i32) -> (i32, i32) {
    %c0_i32 = arith.constant 0 : i32
    %c0_i32_0 = arith.constant 0 : i32
    %c0_i32_1 = arith.constant 0 : i32
    return %c0_i32, %c0_i32_0 : i32, i32
  }
  func.func @transform_5(%arg0: i32) -> (i32, i32, i32) {
    %c0_i32 = arith.constant 0 : i32
    %c0_i32_0 = arith.constant 0 : i32
    %c0_i32_1 = arith.constant 0 : i32
    return %arg0, %c0_i32, %c0_i32_0 : i32, i32, i32
  }
}

module attributes {stable_mosaic.version = 11 : i64} {
  func.func @_mhsa_kernel(%arg0: i32, %arg1: memref<1x8x32xf32, #tpu.memory_space<vmem>>, %arg2: memref<1x8x32xf32, #tpu.memory_space<vmem>>, %arg3: memref<1x8x32xf32, #tpu.memory_space<vmem>>, %arg4: memref<32x96xf32, #tpu.memory_space<vmem>>, %arg5: memref<1x96xf32, #tpu.memory_space<vmem>>, %arg6: memref<1x8x32xf32, #tpu.memory_space<vmem>>, %arg7: memref<1x8x32xf32, #tpu.memory_space<vmem>>) attributes {dimension_semantics = [#tpu.dimension_semantics<parallel>], iteration_bounds = array<i64: 2>, scalar_prefetch = 0 : i64, scratch_operands = 1 : i64, tpu.core_type = #tpu.core_type<tc>, window_params = [{transform_indices = @transform_0, window_bounds = array<i64: 1, 8, 32>}, {transform_indices = @transform_1, window_bounds = array<i64: 1, 8, 32>}, {transform_indices = @transform_2, window_bounds = array<i64: 1, 8, 32>}, {pipeline_mode = #tpu.pipeline_mode<synchronous>, transform_indices = @transform_3, window_bounds = array<i64: 32, 96>}, {pipeline_mode = #tpu.pipeline_mode<synchronous>, transform_indices = @transform_4, window_bounds = array<i64: 1, 96>}, {transform_indices = @transform_5, window_bounds = array<i64: 1, 8, 32>}]} {
    %c0 = arith.constant 0 : index
    %c0_0 = arith.constant 0 : index
    %0 = vector.load %arg4[%c0, %c0_0] : memref<32x96xf32, #tpu.memory_space<vmem>>, vector<32x96xf32>
    %c0_1 = arith.constant 0 : index
    %c0_2 = arith.constant 0 : index
    %1 = vector.load %arg5[%c0_1, %c0_2] : memref<1x96xf32, #tpu.memory_space<vmem>>, vector<1x96xf32>
    %2 = vector.extract_strided_slice %0 {offsets = [0, 0], sizes = [32, 32], strides = [1, 1]} : vector<32x96xf32> to vector<32x32xf32>
    %3 = vector.extract_strided_slice %1 {offsets = [0, 0], sizes = [1, 32], strides = [1, 1]} : vector<1x96xf32> to vector<1x32xf32>
    %c0_3 = arith.constant 0 : index
    %c0_4 = arith.constant 0 : index
    %c0_5 = arith.constant 0 : index
    %4 = vector.load %arg1[%c0_3, %c0_4, %c0_5] : memref<1x8x32xf32, #tpu.memory_space<vmem>>, vector<1x8x32xf32>
    %5 = vector.shape_cast %4 : vector<1x8x32xf32> to vector<8x32xf32>
    %cst = arith.constant dense<0.000000e+00> : vector<8x32xf32>
    %6 = tpu.matmul %5, %2, %cst {dimension_numbers = #tpu.dot_dimension_numbers<[1], [0], [0], [1], [0, 0, 1, 1], [], []>} : vector<8x32xf32>, vector<32x32xf32>, vector<8x32xf32> -> vector<8x32xf32>
    %7 = vector.broadcast %3 : vector<1x32xf32> to vector<8x32xf32>
    %8 = arith.addf %6, %7 : vector<8x32xf32>
    %9 = vector.shape_cast %8 : vector<8x32xf32> to vector<1x8x32xf32>
    %10 = vector.extract_strided_slice %0 {offsets = [0, 32], sizes = [32, 32], strides = [1, 1]} : vector<32x96xf32> to vector<32x32xf32>
    %11 = vector.extract_strided_slice %1 {offsets = [0, 32], sizes = [1, 32], strides = [1, 1]} : vector<1x96xf32> to vector<1x32xf32>
    %c0_6 = arith.constant 0 : index
    %c0_7 = arith.constant 0 : index
    %c0_8 = arith.constant 0 : index
    %12 = vector.load %arg2[%c0_6, %c0_7, %c0_8] : memref<1x8x32xf32, #tpu.memory_space<vmem>>, vector<1x8x32xf32>
    %13 = vector.shape_cast %12 : vector<1x8x32xf32> to vector<8x32xf32>
    %cst_9 = arith.constant dense<0.000000e+00> : vector<8x32xf32>
    %14 = tpu.matmul %13, %10, %cst_9 {dimension_numbers = #tpu.dot_dimension_numbers<[1], [0], [0], [1], [0, 0, 1, 1], [], []>} : vector<8x32xf32>, vector<32x32xf32>, vector<8x32xf32> -> vector<8x32xf32>
    %15 = vector.broadcast %11 : vector<1x32xf32> to vector<8x32xf32>
    %16 = arith.addf %14, %15 : vector<8x32xf32>
    %17 = vector.shape_cast %16 : vector<8x32xf32> to vector<1x8x32xf32>
    %18 = vector.extract_strided_slice %0 {offsets = [0, 64], sizes = [32, 32], strides = [1, 1]} : vector<32x96xf32> to vector<32x32xf32>
    %19 = vector.extract_strided_slice %1 {offsets = [0, 64], sizes = [1, 32], strides = [1, 1]} : vector<1x96xf32> to vector<1x32xf32>
    %c0_10 = arith.constant 0 : index
    %c0_11 = arith.constant 0 : index
    %c0_12 = arith.constant 0 : index
    %20 = vector.load %arg3[%c0_10, %c0_11, %c0_12] : memref<1x8x32xf32, #tpu.memory_space<vmem>>, vector<1x8x32xf32>
    %21 = vector.shape_cast %20 : vector<1x8x32xf32> to vector<8x32xf32>
    %cst_13 = arith.constant dense<0.000000e+00> : vector<8x32xf32>
    %22 = tpu.matmul %21, %18, %cst_13 {dimension_numbers = #tpu.dot_dimension_numbers<[1], [0], [0], [1], [0, 0, 1, 1], [], []>} : vector<8x32xf32>, vector<32x32xf32>, vector<8x32xf32> -> vector<8x32xf32>
    %23 = vector.broadcast %19 : vector<1x32xf32> to vector<8x32xf32>
    %24 = arith.addf %22, %23 : vector<8x32xf32>
    %25 = vector.shape_cast %24 : vector<8x32xf32> to vector<1x8x32xf32>
    %26 = vector.extract_strided_slice %9 {offsets = [0, 0, 0], sizes = [1, 8, 8], strides = [1, 1, 1]} : vector<1x8x32xf32> to vector<1x8x8xf32>
    %cst_14 = arith.constant 0.353553385 : f32
    %27 = vector.broadcast %cst_14 : f32 to vector<1x8x8xf32>
    %28 = arith.mulf %26, %27 : vector<1x8x8xf32>
    %29 = vector.extract_strided_slice %17 {offsets = [0, 0, 0], sizes = [1, 8, 8], strides = [1, 1, 1]} : vector<1x8x32xf32> to vector<1x8x8xf32>
    %30 = vector.extract_strided_slice %25 {offsets = [0, 0, 0], sizes = [1, 8, 8], strides = [1, 1, 1]} : vector<1x8x32xf32> to vector<1x8x8xf32>
    "tpu.trace_start"() <{level = 10 : i32, message = "bqd,bkd->bqk"}> : () -> ()
    %cst_15 = arith.constant dense<0.000000e+00> : vector<1x8x8xf32>
    %31 = tpu.matmul %28, %29, %cst_15 {dimension_numbers = #tpu.dot_dimension_numbers<[2], [2], [1], [1], [0, 0, 0, 1, 1, 1], [0], [0]>} : vector<1x8x8xf32>, vector<1x8x8xf32>, vector<1x8x8xf32> -> vector<1x8x8xf32>
    "tpu.trace_stop"() : () -> ()
    %cst_16 = arith.constant dense<0xFF800000> : vector<1x8xf32>
    %32 = vector.multi_reduction <maximumf>, %31, %cst_16 [2] : vector<1x8x8xf32> to vector<1x8xf32>
    %33 = vector.shape_cast %32 : vector<1x8xf32> to vector<1x8x1xf32>
    %34 = vector.broadcast %33 : vector<1x8x1xf32> to vector<1x8x8xf32>
    %35 = arith.subf %31, %34 : vector<1x8x8xf32>
    %cst_17 = arith.constant 1.000000e+02 : f32
    %36 = vector.broadcast %cst_17 : f32 to vector<1x8x8xf32>
    %37 = arith.mulf %35, %36 : vector<1x8x8xf32>
    %38 = math.exp %37 : vector<1x8x8xf32>
    %cst_18 = arith.constant dense<0.000000e+00> : vector<1x8xf32>
    %39 = vector.multi_reduction <add>, %38, %cst_18 [2] : vector<1x8x8xf32> to vector<1x8xf32>
    %40 = vector.shape_cast %39 : vector<1x8xf32> to vector<1x8x1xf32>
    %cst_19 = arith.constant 1.900000e-02 : f32
    %41 = vector.broadcast %cst_19 : f32 to vector<1x8x1xf32>
    %42 = arith.mulf %41, %40 : vector<1x8x1xf32>
    %43 = vector.broadcast %42 : vector<1x8x1xf32> to vector<1x8x8xf32>
    %44 = arith.cmpf oge, %38, %43 : vector<1x8x8xf32>
    %45 = math.exp %35 : vector<1x8x8xf32>
    %cst_20 = arith.constant 0.000000e+00 : f32
    %46 = vector.broadcast %cst_20 : f32 to vector<1x8x8xf32>
    %47 = arith.select %44, %45, %46 : vector<1x8x8xi1>, vector<1x8x8xf32>
    %cst_21 = arith.constant dense<0.000000e+00> : vector<1x8xf32>
    %48 = vector.multi_reduction <add>, %47, %cst_21 [2] : vector<1x8x8xf32> to vector<1x8xf32>
    %49 = vector.shape_cast %48 : vector<1x8xf32> to vector<1x8x1xf32>
    %50 = tpu.reciprocal %49 {approx = true} : vector<1x8x1xf32> -> vector<1x8x1xf32>
    %51 = vector.broadcast %50 : vector<1x8x1xf32> to vector<1x8x8xf32>
    %52 = arith.mulf %47, %51 : vector<1x8x8xf32>
    "tpu.trace_start"() <{level = 10 : i32, message = "bqk,bkd->bqd"}> : () -> ()
    %cst_22 = arith.constant dense<0.000000e+00> : vector<1x8x8xf32>
    %53 = tpu.matmul %52, %30, %cst_22 {dimension_numbers = #tpu.dot_dimension_numbers<[2], [1], [1], [2], [0, 0, 0, 1, 1, 2], [0], [0]>} : vector<1x8x8xf32>, vector<1x8x8xf32>, vector<1x8x8xf32> -> vector<1x8x8xf32>
    "tpu.trace_stop"() : () -> ()
    %c0_23 = arith.constant 0 : index
    %c0_24 = arith.constant 0 : index
    %c0_25 = arith.constant 0 : index
    %54 = vector.load %arg7[%c0_23, %c0_24, %c0_25] : memref<1x8x32xf32, #tpu.memory_space<vmem>>, vector<1x8x8xf32>
    tpu.vector_store %arg7[%c0_23, %c0_24, %c0_25], %53 {strides = array<i32>} : memref<1x8x32xf32, #tpu.memory_space<vmem>>, vector<1x8x8xf32>,
    %55 = vector.extract_strided_slice %9 {offsets = [0, 0, 8], sizes = [1, 8, 8], strides = [1, 1, 1]} : vector<1x8x32xf32> to vector<1x8x8xf32>
    %cst_26 = arith.constant 0.353553385 : f32
    %56 = vector.broadcast %cst_26 : f32 to vector<1x8x8xf32>
    %57 = arith.mulf %55, %56 : vector<1x8x8xf32>
    %58 = vector.extract_strided_slice %17 {offsets = [0, 0, 8], sizes = [1, 8, 8], strides = [1, 1, 1]} : vector<1x8x32xf32> to vector<1x8x8xf32>
    %59 = vector.extract_strided_slice %25 {offsets = [0, 0, 8], sizes = [1, 8, 8], strides = [1, 1, 1]} : vector<1x8x32xf32> to vector<1x8x8xf32>
    "tpu.trace_start"() <{level = 10 : i32, message = "bqd,bkd->bqk"}> : () -> ()
    %cst_27 = arith.constant dense<0.000000e+00> : vector<1x8x8xf32>
    %60 = tpu.matmul %57, %58, %cst_27 {dimension_numbers = #tpu.dot_dimension_numbers<[2], [2], [1], [1], [0, 0, 0, 1, 1, 1], [0], [0]>} : vector<1x8x8xf32>, vector<1x8x8xf32>, vector<1x8x8xf32> -> vector<1x8x8xf32>
    "tpu.trace_stop"() : () -> ()
    %cst_28 = arith.constant dense<0xFF800000> : vector<1x8xf32>
    %61 = vector.multi_reduction <maximumf>, %60, %cst_28 [2] : vector<1x8x8xf32> to vector<1x8xf32>
    %62 = vector.shape_cast %61 : vector<1x8xf32> to vector<1x8x1xf32>
    %63 = vector.broadcast %62 : vector<1x8x1xf32> to vector<1x8x8xf32>
    %64 = arith.subf %60, %63 : vector<1x8x8xf32>
    %cst_29 = arith.constant 1.000000e+02 : f32
    %65 = vector.broadcast %cst_29 : f32 to vector<1x8x8xf32>
    %66 = arith.mulf %64, %65 : vector<1x8x8xf32>
    %67 = math.exp %66 : vector<1x8x8xf32>
    %cst_30 = arith.constant dense<0.000000e+00> : vector<1x8xf32>
    %68 = vector.multi_reduction <add>, %67, %cst_30 [2] : vector<1x8x8xf32> to vector<1x8xf32>
    %69 = vector.shape_cast %68 : vector<1x8xf32> to vector<1x8x1xf32>
    %cst_31 = arith.constant 1.900000e-02 : f32
    %70 = vector.broadcast %cst_31 : f32 to vector<1x8x1xf32>
    %71 = arith.mulf %70, %69 : vector<1x8x1xf32>
    %72 = vector.broadcast %71 : vector<1x8x1xf32> to vector<1x8x8xf32>
    %73 = arith.cmpf oge, %67, %72 : vector<1x8x8xf32>
    %74 = math.exp %64 : vector<1x8x8xf32>
    %cst_32 = arith.constant 0.000000e+00 : f32
    %75 = vector.broadcast %cst_32 : f32 to vector<1x8x8xf32>
    %76 = arith.select %73, %74, %75 : vector<1x8x8xi1>, vector<1x8x8xf32>
    %cst_33 = arith.constant dense<0.000000e+00> : vector<1x8xf32>
    %77 = vector.multi_reduction <add>, %76, %cst_33 [2] : vector<1x8x8xf32> to vector<1x8xf32>
    %78 = vector.shape_cast %77 : vector<1x8xf32> to vector<1x8x1xf32>
    %79 = tpu.reciprocal %78 {approx = true} : vector<1x8x1xf32> -> vector<1x8x1xf32>
    %80 = vector.broadcast %79 : vector<1x8x1xf32> to vector<1x8x8xf32>
    %81 = arith.mulf %76, %80 : vector<1x8x8xf32>
    "tpu.trace_start"() <{level = 10 : i32, message = "bqk,bkd->bqd"}> : () -> ()
    %cst_34 = arith.constant dense<0.000000e+00> : vector<1x8x8xf32>
    %82 = tpu.matmul %81, %59, %cst_34 {dimension_numbers = #tpu.dot_dimension_numbers<[2], [1], [1], [2], [0, 0, 0, 1, 1, 2], [0], [0]>} : vector<1x8x8xf32>, vector<1x8x8xf32>, vector<1x8x8xf32> -> vector<1x8x8xf32>
    "tpu.trace_stop"() : () -> ()
    %c0_35 = arith.constant 0 : index
    %c0_36 = arith.constant 0 : index
    %c8 = arith.constant 8 : index
    %83 = vector.load %arg7[%c0_35, %c0_36, %c8] : memref<1x8x32xf32, #tpu.memory_space<vmem>>, vector<1x8x8xf32>
    tpu.vector_store %arg7[%c0_35, %c0_36, %c8], %82 {strides = array<i32>} : memref<1x8x32xf32, #tpu.memory_space<vmem>>, vector<1x8x8xf32>,
    %84 = vector.extract_strided_slice %9 {offsets = [0, 0, 16], sizes = [1, 8, 8], strides = [1, 1, 1]} : vector<1x8x32xf32> to vector<1x8x8xf32>
    %cst_37 = arith.constant 0.353553385 : f32
    %85 = vector.broadcast %cst_37 : f32 to vector<1x8x8xf32>
    %86 = arith.mulf %84, %85 : vector<1x8x8xf32>
    %87 = vector.extract_strided_slice %17 {offsets = [0, 0, 16], sizes = [1, 8, 8], strides = [1, 1, 1]} : vector<1x8x32xf32> to vector<1x8x8xf32>
    %88 = vector.extract_strided_slice %25 {offsets = [0, 0, 16], sizes = [1, 8, 8], strides = [1, 1, 1]} : vector<1x8x32xf32> to vector<1x8x8xf32>
    "tpu.trace_start"() <{level = 10 : i32, message = "bqd,bkd->bqk"}> : () -> ()
    %cst_38 = arith.constant dense<0.000000e+00> : vector<1x8x8xf32>
    %89 = tpu.matmul %86, %87, %cst_38 {dimension_numbers = #tpu.dot_dimension_numbers<[2], [2], [1], [1], [0, 0, 0, 1, 1, 1], [0], [0]>} : vector<1x8x8xf32>, vector<1x8x8xf32>, vector<1x8x8xf32> -> vector<1x8x8xf32>
    "tpu.trace_stop"() : () -> ()
    %cst_39 = arith.constant dense<0xFF800000> : vector<1x8xf32>
    %90 = vector.multi_reduction <maximumf>, %89, %cst_39 [2] : vector<1x8x8xf32> to vector<1x8xf32>
    %91 = vector.shape_cast %90 : vector<1x8xf32> to vector<1x8x1xf32>
    %92 = vector.broadcast %91 : vector<1x8x1xf32> to vector<1x8x8xf32>
    %93 = arith.subf %89, %92 : vector<1x8x8xf32>
    %cst_40 = arith.constant 1.000000e+02 : f32
    %94 = vector.broadcast %cst_40 : f32 to vector<1x8x8xf32>
    %95 = arith.mulf %93, %94 : vector<1x8x8xf32>
    %96 = math.exp %95 : vector<1x8x8xf32>
    %cst_41 = arith.constant dense<0.000000e+00> : vector<1x8xf32>
    %97 = vector.multi_reduction <add>, %96, %cst_41 [2] : vector<1x8x8xf32> to vector<1x8xf32>
    %98 = vector.shape_cast %97 : vector<1x8xf32> to vector<1x8x1xf32>
    %cst_42 = arith.constant 1.900000e-02 : f32
    %99 = vector.broadcast %cst_42 : f32 to vector<1x8x1xf32>
    %100 = arith.mulf %99, %98 : vector<1x8x1xf32>
    %101 = vector.broadcast %100 : vector<1x8x1xf32> to vector<1x8x8xf32>
    %102 = arith.cmpf oge, %96, %101 : vector<1x8x8xf32>
    %103 = math.exp %93 : vector<1x8x8xf32>
    %cst_43 = arith.constant 0.000000e+00 : f32
    %104 = vector.broadcast %cst_43 : f32 to vector<1x8x8xf32>
    %105 = arith.select %102, %103, %104 : vector<1x8x8xi1>, vector<1x8x8xf32>
    %cst_44 = arith.constant dense<0.000000e+00> : vector<1x8xf32>
    %106 = vector.multi_reduction <add>, %105, %cst_44 [2] : vector<1x8x8xf32> to vector<1x8xf32>
    %107 = vector.shape_cast %106 : vector<1x8xf32> to vector<1x8x1xf32>
    %108 = tpu.reciprocal %107 {approx = true} : vector<1x8x1xf32> -> vector<1x8x1xf32>
    %109 = vector.broadcast %108 : vector<1x8x1xf32> to vector<1x8x8xf32>
    %110 = arith.mulf %105, %109 : vector<1x8x8xf32>
    "tpu.trace_start"() <{level = 10 : i32, message = "bqk,bkd->bqd"}> : () -> ()
    %cst_45 = arith.constant dense<0.000000e+00> : vector<1x8x8xf32>
    %111 = tpu.matmul %110, %88, %cst_45 {dimension_numbers = #tpu.dot_dimension_numbers<[2], [1], [1], [2], [0, 0, 0, 1, 1, 2], [0], [0]>} : vector<1x8x8xf32>, vector<1x8x8xf32>, vector<1x8x8xf32> -> vector<1x8x8xf32>
    "tpu.trace_stop"() : () -> ()
    %c0_46 = arith.constant 0 : index
    %c0_47 = arith.constant 0 : index
    %c16 = arith.constant 16 : index
    %112 = vector.load %arg7[%c0_46, %c0_47, %c16] : memref<1x8x32xf32, #tpu.memory_space<vmem>>, vector<1x8x8xf32>
    tpu.vector_store %arg7[%c0_46, %c0_47, %c16], %111 {strides = array<i32>} : memref<1x8x32xf32, #tpu.memory_space<vmem>>, vector<1x8x8xf32>,
    %113 = vector.extract_strided_slice %9 {offsets = [0, 0, 24], sizes = [1, 8, 8], strides = [1, 1, 1]} : vector<1x8x32xf32> to vector<1x8x8xf32>
    %cst_48 = arith.constant 0.353553385 : f32
    %114 = vector.broadcast %cst_48 : f32 to vector<1x8x8xf32>
    %115 = arith.mulf %113, %114 : vector<1x8x8xf32>
    %116 = vector.extract_strided_slice %17 {offsets = [0, 0, 24], sizes = [1, 8, 8], strides = [1, 1, 1]} : vector<1x8x32xf32> to vector<1x8x8xf32>
    %117 = vector.extract_strided_slice %25 {offsets = [0, 0, 24], sizes = [1, 8, 8], strides = [1, 1, 1]} : vector<1x8x32xf32> to vector<1x8x8xf32>
    "tpu.trace_start"() <{level = 10 : i32, message = "bqd,bkd->bqk"}> : () -> ()
    %cst_49 = arith.constant dense<0.000000e+00> : vector<1x8x8xf32>
    %118 = tpu.matmul %115, %116, %cst_49 {dimension_numbers = #tpu.dot_dimension_numbers<[2], [2], [1], [1], [0, 0, 0, 1, 1, 1], [0], [0]>} : vector<1x8x8xf32>, vector<1x8x8xf32>, vector<1x8x8xf32> -> vector<1x8x8xf32>
    "tpu.trace_stop"() : () -> ()
    %cst_50 = arith.constant dense<0xFF800000> : vector<1x8xf32>
    %119 = vector.multi_reduction <maximumf>, %118, %cst_50 [2] : vector<1x8x8xf32> to vector<1x8xf32>
    %120 = vector.shape_cast %119 : vector<1x8xf32> to vector<1x8x1xf32>
    %121 = vector.broadcast %120 : vector<1x8x1xf32> to vector<1x8x8xf32>
    %122 = arith.subf %118, %121 : vector<1x8x8xf32>
    %cst_51 = arith.constant 1.000000e+02 : f32
    %123 = vector.broadcast %cst_51 : f32 to vector<1x8x8xf32>
    %124 = arith.mulf %122, %123 : vector<1x8x8xf32>
    %125 = math.exp %124 : vector<1x8x8xf32>
    %cst_52 = arith.constant dense<0.000000e+00> : vector<1x8xf32>
    %126 = vector.multi_reduction <add>, %125, %cst_52 [2] : vector<1x8x8xf32> to vector<1x8xf32>
    %127 = vector.shape_cast %126 : vector<1x8xf32> to vector<1x8x1xf32>
    %cst_53 = arith.constant 1.900000e-02 : f32
    %128 = vector.broadcast %cst_53 : f32 to vector<1x8x1xf32>
    %129 = arith.mulf %128, %127 : vector<1x8x1xf32>
    %130 = vector.broadcast %129 : vector<1x8x1xf32> to vector<1x8x8xf32>
    %131 = arith.cmpf oge, %125, %130 : vector<1x8x8xf32>
    %132 = math.exp %122 : vector<1x8x8xf32>
    %cst_54 = arith.constant 0.000000e+00 : f32
    %133 = vector.broadcast %cst_54 : f32 to vector<1x8x8xf32>
    %134 = arith.select %131, %132, %133 : vector<1x8x8xi1>, vector<1x8x8xf32>
    %cst_55 = arith.constant dense<0.000000e+00> : vector<1x8xf32>
    %135 = vector.multi_reduction <add>, %134, %cst_55 [2] : vector<1x8x8xf32> to vector<1x8xf32>
    %136 = vector.shape_cast %135 : vector<1x8xf32> to vector<1x8x1xf32>
    %137 = tpu.reciprocal %136 {approx = true} : vector<1x8x1xf32> -> vector<1x8x1xf32>
    %138 = vector.broadcast %137 : vector<1x8x1xf32> to vector<1x8x8xf32>
    %139 = arith.mulf %134, %138 : vector<1x8x8xf32>
    "tpu.trace_start"() <{level = 10 : i32, message = "bqk,bkd->bqd"}> : () -> ()
    %cst_56 = arith.constant dense<0.000000e+00> : vector<1x8x8xf32>
    %140 = tpu.matmul %139, %117, %cst_56 {dimension_numbers = #tpu.dot_dimension_numbers<[2], [1], [1], [2], [0, 0, 0, 1, 1, 2], [0], [0]>} : vector<1x8x8xf32>, vector<1x8x8xf32>, vector<1x8x8xf32> -> vector<1x8x8xf32>
    "tpu.trace_stop"() : () -> ()
    %c0_57 = arith.constant 0 : index
    %c0_58 = arith.constant 0 : index
    %c24 = arith.constant 24 : index
    %141 = vector.load %arg7[%c0_57, %c0_58, %c24] : memref<1x8x32xf32, #tpu.memory_space<vmem>>, vector<1x8x8xf32>
    tpu.vector_store %arg7[%c0_57, %c0_58, %c24], %140 {strides = array<i32>} : memref<1x8x32xf32, #tpu.memory_space<vmem>>, vector<1x8x8xf32>,
    %c0_59 = arith.constant 0 : index
    %c0_60 = arith.constant 0 : index
    %c0_61 = arith.constant 0 : index
    %142 = vector.load %arg7[%c0_59, %c0_60, %c0_61] : memref<1x8x32xf32, #tpu.memory_space<vmem>>, vector<1x8x32xf32>
    %c0_62 = arith.constant 0 : index
    %c0_63 = arith.constant 0 : index
    %c0_64 = arith.constant 0 : index
    %143 = vector.load %arg6[%c0_62, %c0_63, %c0_64] : memref<1x8x32xf32, #tpu.memory_space<vmem>>, vector<1x8x32xf32>
    tpu.vector_store %arg6[%c0_62, %c0_63, %c0_64], %142 {strides = array<i32>} : memref<1x8x32xf32, #tpu.memory_space<vmem>>, vector<1x8x32xf32>,
    return
  }
  func.func @transform_0(%arg0: i32) -> (i32, i32, i32) {
    %c0_i32 = arith.constant 0 : i32
    %c0_i32_0 = arith.constant 0 : i32
    %c0_i32_1 = arith.constant 0 : i32
    return %arg0, %c0_i32, %c0_i32_0 : i32, i32, i32
  }
  func.func @transform_1(%arg0: i32) -> (i32, i32, i32) {
    %c0_i32 = arith.constant 0 : i32
    %c0_i32_0 = arith.constant 0 : i32
    %c0_i32_1 = arith.constant 0 : i32
    return %arg0, %c0_i32, %c0_i32_0 : i32, i32, i32
  }
  func.func @transform_2(%arg0: i32) -> (i32, i32, i32) {
    %c0_i32 = arith.constant 0 : i32
    %c0_i32_0 = arith.constant 0 : i32
    %c0_i32_1 = arith.constant 0 : i32
    return %arg0, %c0_i32, %c0_i32_0 : i32, i32, i32
  }
  func.func @transform_3(%arg0: i32) -> (i32, i32) {
    %c0_i32 = arith.constant 0 : i32
    %c0_i32_0 = arith.constant 0 : i32
    %c0_i32_1 = arith.constant 0 : i32
    return %c0_i32, %c0_i32_0 : i32, i32
  }
  func.func @transform_4(%arg0: i32) -> (i32, i32) {
    %c0_i32 = arith.constant 0 : i32
    %c0_i32_0 = arith.constant 0 : i32
    %c0_i32_1 = arith.constant 0 : i32
    return %c0_i32, %c0_i32_0 : i32, i32
  }
  func.func @transform_5(%arg0: i32) -> (i32, i32, i32) {
    %c0_i32 = arith.constant 0 : i32
    %c0_i32_0 = arith.constant 0 : i32
    %c0_i32_1 = arith.constant 0 : i32
    return %arg0, %c0_i32, %c0_i32_0 : i32, i32, i32
  }
}

</mosaic_0001>

<bundles_post_ra>
// kernel: tpu_custom_call.1
= control target key start
LH: loop header
LB: loop body
LE: loop exit
PB: predicated region body
PF: predicated region fallthrough
CT: control target
= control target key end

     0   :  { %s1556_s0 = inlined_call_operand.hbm [shape: f32[2,8,32], index: 0, kind: input, shape index: {}]   ;;  %s1557_s1 = inlined_call_operand.hbm [shape: f32[2,8,32], index: 1, kind: input, shape index: {}]   ;;  %s1558_s2 = inlined_call_operand.hbm [shape: f32[2,8,32], index: 2, kind: input, shape index: {}]   ;;  %s1559_s3 = inlined_call_operand.hbm [shape: f32[32,96], index: 3, kind: input, shape index: {}]   ;;  %s1560_s4 = inlined_call_operand.vmem [shape: f32[1,96], index: 4, kind: input, shape index: {}]   ;;  %s1561_s5 = inlined_call_operand.hbm [shape: f32[2,8,32], index: 5, kind: output, shape index: {}]  }
   0x1   :  { %1566 = sst [smem:[#allocation19_spill]] %s1557_s1 }
   0x2   :  { %1567 = sst [smem:[#allocation20_spill]] %s1559_s3 }
   0x3   :  { %10 = vsyncpa [#allocation4], 0 }
   0x4   :  { %12 = vsyncpa [#allocation4 + $0x1], 0 }
   0x5   :  { %13 = vsyncpa [#allocation7], 0 }
   0x6   :  { %15 = vsyncpa [#allocation7 + $0x1], 0 }
   0x7   :  { %16 = vsyncpa [#allocation10], 0 }
   0x8   :  { %17 = vsyncpa [#allocation5], 0 }
   0x9   :  { %19 = vsyncpa [#allocation5 + $0x1], 0  ;;  %s1297_s18 = smov 0   ;;  %s1299_s19 = smov 0  }
   0xa   :  { %s1301_s20 = smov 0   ;;  %s1303_s21 = smov 0  }
   0xb LB: > { %1568 = sst [smem:[#allocation16_spill]] %s1254_s21  ;;  %s1318_s22 = sadd.s32 4294967295, %s1254_s21   ;;  %s1254_s21 = sphi %s1303_s21, %s1581_s21   ;;  %s1250_s20 = sphi %s1301_s20, %s1585_s20   ;;  %s1246_s19 = sphi %s1299_s19, %s1584_s19   ;;  %s1242_s18 = sphi %s1297_s18, %s1583_s18  }
   0xc   : > { %s903_s23 = sadd.s32 4294967294, %s1254_s21   ;;  %s1322_s24 = sadd.s32 1, %s1254_s21  }
   0xd   : > { %1569 = sst [smem:[#allocation17_spill]] %s1322_s24  ;;  %s32_s25 = sadd.s32 1, %s1250_s20 }
   0xe   : > { %s29_s26 = ssub.s32 %s1254_s21, %s1322_s24  ;;  %p39_p0 = scmp.ne.s32.totalorder %s1250_s20, %s1246_s19 }
   0xf   : > { %p30_p1 = scmp.eq.s32.totalorder %s29_s26, 0  ;;  %p40_p2 = scmp.eq.s32.totalorder %s1254_s21, 0 }
  0x10   : > { %p45_p3 = scmp.ne.s32.totalorder %s1246_s19, %s1242_s18  ;;  %p163_p4 = scmp.eq.s32.totalorder %s1318_s22, 1 }
  0x11   : > { %s1334_s27 = scalar_select %p30_p1, %s1250_s20, %s32_s25  }
  0x12   : > { %p41_p5 = por %p40_p2, %p39_p0  ;;  %p1336_p6 = por %p163_p4, %p39_p0 }
  0x13   : > { %1570 = sst [smem:[#allocation18_spill]] %s1334_s27  ;;  %p169_p7 = scmp.eq.s32.totalorder %s903_s23, 1 }
  0x14   : > { %p969_p9 = scmp.lt.s32.totalorder %s1254_s21, 2  ;;  %s1562_s30 = sand.u32 1, %s1250_s20  }
  0x15   : > { %p1345_p10 = por %p169_p7, %p45_p3  ;;  %s1352_s6 = sshll.u32 %s1562_s30, 3 }
  0x16   : > { %s1355_s7 = sshll.u32 %s1254_s21, 3  ;;  %p1357_p11 = pnand %p969_p9, %p41_p5 }
  0x17   : > { %s225_s9 = sand.u32 1, %s1254_s21   ;;  %s1574_s1 = sld [smem:[#allocation19_spill]] }
  0x18   : > { %s229_s14 = scalar_lea.vmem [#allocation6], %s1352_s6  ;;  %s1367_s16 = scalar_lea.sflag [#allocation7], %s225_s9 }
  0x19   : > { %s237_s15 = sshll.u32 %s229_s14, 4  ;;  %p1064_p13 = pneg %p1357_p11  ;;  %s238_s15 = int_to_ptr.vmem [resolvable:$true] %s237_s15 }
  0x1d   : > { %s233_s12 = scalar_lea.hbm %s1574_s1, %s1355_s7  ;;  %s1067_s10 = scalar_lea.hbm %s1574_s1, 16 }
  0x1e   : > { %s235_s13 = sshll.u32 %s233_s12, 4  ;;  %s236_s13 = int_to_ptr.hbm [resolvable:$true] %s235_s13 }
  0x1f   : > { %s1060_s17 = sshra.s32 %s236_s13, 4  ;;  %s1061_s17 = int_to_ptr.hbm [resolvable:$true] %s1060_s17 }
  0x20   : > { %s1062_s23 = scalar_lea.hbm %s1061_s17, 8  ;;  %p1068_p2 = scmp.lt.s32.totalorder %s1061_s17, %s1574_s1 }
  0x21   : > { %p1063_p12 = scmp.ne.s32.totalorder %s1061_s17, %s1062_s23  ;;  %p1069_p4 = scmp.lt.s32.totalorder %s1067_s10, %s1062_s23 }
  0x23   : > { %p1065_p0 = pnand %p1064_p13, %p1063_p12  ;;  %p1070_p5 = por %p1069_p4, %p1068_p2 }
  0x25   : > { %p1066_p1 = pneg %p1065_p0 }
  0x27   : > { %p1071_p7 = pnand %p1070_p5, %p1066_p1 }
  0x29   : > { %1074 = shalt.err (!%p1071_p7)
}
  0x2a   : > { %960 = dma.hbm_to_vmem [thread:$0]  (!%p1357_p11), %s236_s13, 128, %s238_s15, %s1367_s16  }
  0x2b   : > { %p46_p9 = scmp.eq.s32.totalorder %s1318_s22, 0  ;;  %p904_p12 = scmp.ge.s32.totalorder %s1254_s21, 1 }
  0x2c   : > { %p176_p0 = scmp.lt.s32.totalorder %s1254_s21, 3  ;;  %s1575_s3 = sld [smem:[#allocation20_spill]] }
  0x2d   : > { %p1394_p1 = por %p46_p9, %p45_p3  ;;  %s1256_s13 = smov [#allocation9]  }
  0x2e   : > { %p1398_p2 = pnand %p904_p12, %p176_p0  ;;  %s189_s15 = sshll.u32 %s1256_s13, 4  ;;  %s190_s15 = int_to_ptr.vmem [resolvable:$true] %s189_s15 }
  0x2f   : > { %s214_s11 = scalar_lea.hbm %s1556_s0, %s1355_s7  ;;  %s210_s12 = scalar_lea.vmem [#allocation3], %s1352_s6 }
  0x30   : > { %p950_p4 = pneg %p1398_p2  ;;  %s218_s9 = sshll.u32 %s210_s12, 4  ;;  %s219_s9 = int_to_ptr.vmem [resolvable:$true] %s218_s9 }
  0x31   : > { %s216_s14 = sshll.u32 %s214_s11, 4  ;;  %s1257_s30 = smov 128   ;;  %s217_s14 = int_to_ptr.hbm [resolvable:$true] %s216_s14 }
  0x32   : > { %s187_s17 = sshll.u32 %s1575_s3, 4  ;;  %p951_p5 = pnand %p950_p4, %p46_p9  ;;  %s188_s17 = int_to_ptr.hbm [resolvable:$true] %s187_s17 }
  0x33   : > { %s1258_s1 = smov 8   ;;  %s1578_s3 = sand.u32 1, %s1250_s20  }
  0x34   : > { %953 = dma.hbm_to_vmem [thread:$0]  (!%p951_p5), %s188_s17, 512, %s190_s15, [#allocation10], %s1257_s30, %s1257_s30, %s1258_s1  }
  0x35   : > { %s207_s13 = scalar_lea.sflag [#allocation4], %s1578_s3  ;;  %s1120_s27 = sshra.s32 %s217_s14, 4  ;;  %s1121_s27 = int_to_ptr.hbm [resolvable:$true] %s1120_s27 }
  0x36   : > { %s1122_s24 = scalar_lea.hbm %s1121_s27, 8  ;;  %s1127_s12 = scalar_lea.hbm %s1556_s0, 16 }
  0x37   : > { %p1123_p3 = scmp.ne.s32.totalorder %s1121_s27, %s1122_s24  ;;  %p1128_p0 = scmp.lt.s32.totalorder %s1121_s27, %s1556_s0 }
  0x38   : > { %p1129_p4 = scmp.lt.s32.totalorder %s1127_s12, %s1122_s24 }
  0x39   : > { %p1125_p7 = pnand %p1123_p3, %p1064_p13 }
  0x3a   : > { %p1130_p5 = por %p1129_p4, %p1128_p0 }
  0x3b   : > { %p1126_p12 = pneg %p1125_p7 }
  0x3d   : > { %p1131_p8 = pnand %p1130_p5, %p1126_p12 }
  0x3f   : > { %1134 = shalt.err (!%p1131_p8)
}
  0x40   : > { %957 = dma.hbm_to_vmem [thread:$0]  (!%p1357_p11), %s217_s14, 128, %s219_s9, %s207_s13  }
  0x41   : > { %s252_s30 = scalar_lea.hbm %s1558_s2, %s1355_s7  ;;  %s248_s15 = scalar_lea.vmem [#allocation8], %s1352_s6 }
  0x42   : > { %s254_s17 = sshll.u32 %s252_s30, 4  ;;  %s256_s26 = sshll.u32 %s248_s15, 4  ;;  %s255_s17 = int_to_ptr.hbm [resolvable:$true] %s254_s17  ;;  %s257_s26 = int_to_ptr.vmem [resolvable:$true] %s256_s26 }
  0x43   : > { %s1150_s21 = sshra.s32 %s255_s17, 4  ;;  %s1157_s9 = scalar_lea.hbm %s1558_s2, 16  ;;  %s1151_s21 = int_to_ptr.hbm [resolvable:$true] %s1150_s21 }
  0x44   : > { %s1152_s24 = scalar_lea.hbm %s1151_s21, 8  ;;  %p1158_p12 = scmp.lt.s32.totalorder %s1151_s21, %s1558_s2 }
  0x45   : > { %p1153_p3 = scmp.ne.s32.totalorder %s1151_s21, %s1152_s24  ;;  %p1159_p0 = scmp.lt.s32.totalorder %s1157_s9, %s1152_s24 }
  0x47   : > { %p1155_p8 = pnand %p1153_p3, %p1064_p13  ;;  %p1160_p4 = por %p1159_p0, %p1158_p12 }
  0x49   : > { %p1156_p7 = pneg %p1155_p8 }
  0x4b   : > { %p1161_p5 = pnand %p1160_p4, %p1156_p7 }
  0x4d   : > { %1164 = shalt.err (!%p1161_p5)
}
  0x4e   : > { %963 = dma.hbm_to_vmem [thread:$0]  (!%p1357_p11), %s255_s17, 128, %s257_s26, %s1367_s16  }
  0x4f   : > { %265 = sbr.rel (%p1398_p2) target bundleno = 1239 (0x4d7), region = 40  ;;  %s1444_s6 = sand.u32 (!%p1398_p2), 1, %s1246_s19  }
  0x50   : > { %s1447_s7 = sshll.u32 (!%p1398_p2), %s1444_s6, 3  ;;  %s268_s12 = scalar_lea.sflag (!%p1398_p2), [#allocation4], %s1444_s6 }
  0x51   : > { %s271_s11 = scalar_lea.vmem (!%p1398_p2), [#allocation3], %s1447_s7 }
  0x54   : > { %1225 = dma.done.wait (%p1394_p1), %s268_s12, 128  }
  0x55   : > { %1227 = vsyncadd (%p1394_p1), %s268_s12, 4294967168  ;;  %s277_s8 = sand.u32 1, %s1318_s22   ;;  %s281_s25 = scalar_lea.vmem [#allocation6], %s1447_s7 }
  0x56   : > { %s278_s16 = scalar_lea.sflag [#allocation7], %s277_s8 }
  0x57   : > { %1229 = dma.done.wait (%p1394_p1), %s278_s16, 256  }
  0x58   : > { %1231 = vsyncadd (%p1394_p1), %s278_s16, 4294967040  ;;  %s291_s1 = scalar_lea.vmem [#allocation8], %s1447_s7 }
  0x59   : > { %1233 = dma.done.wait (%p46_p9), [#allocation10], 512  }
  0x5a   : > { %1235 = vsyncadd (%p46_p9), [#allocation10], 4294966784  ;;  %v336_v0 = vld [vmem:[#allocation9 + $0x10] sm:$0xff]  ;;  %v337_v1 = vld [vmem:[#allocation9 + $0x18] sm:$0xff]  ;;  %s1259_s3 = smov 96   ;;  %vm343_vm0 = vcmask 261120  }
  0x5b   : > { %v1015_v2 = vpack.i.bf16 %v336_v0, %v337_v1  ;;  %359 = vmatpush.msra.mxu0 %v337_v1  ;;  %v334_v3 = vld [vmem:[#allocation9] sm:$0xff]  ;;  %v335_v4 = vld [vmem:[#allocation9 + $0x8] sm:$0xff]  ;;  %v339_v5 = vld [vmem:[%s271_s11] sm:$0xff]  ;;  %s1260_s17 = smov 64   ;;  %s1261_s15 = smov 112   ;;  %vm450_vm1 = vcmask 64512  }
  0x5c   : > { %v1020_v6 = vpack.i.bf16 %v334_v3, %v335_v4  ;;  %v1470_v7 = vld [vmem:[%s1560_s4] ss:$0 sm:$0xff]  ;;  %v410_v25 = vld [vmem:[%s291_s1] sm:$0xff]  ;;  %s1262_s26 = smov 120   ;;  %s1263_s21 = smov 104   ;;  %vm600_vm6 = vcmask 130112  }
  0x5d   : > { %1016 = vrot.lane.b32.xlu0 %v1015_v2, %s1259_s3  ;;  %360 = vmatpush.msra.mxu0 %v336_v0  ;;  %v367_v14 = vld [vmem:[%s281_s25] sm:$0xff]  ;;  %s1264_s24 = smov 8   ;;  %s1265_s27 = smov 16   ;;  %vm680_vm7 = vcmask 195712   ;;  %vm760_vm8 = vcmask 261312  }
  0x5e   : > { %384 = vrot.lane.b32.xlu1 %v1470_v7, %s1259_s3  ;;  %1031 = vrot.lane.b32.xlu2 %v1020_v6, %s1260_s17  ;;  %s1266_s10 = smov 24   ;;  %s935_s9 = sshll.u32 %s1318_s22, 3 }
  0x5f   : > { %361 = vmatpush.msra.mxu0 %v335_v4  ;;  %s775_s12 = scalar_lea.hbm %s1561_s5, %s935_s9  ;;  %s333_s11 = scalar_lea.vmem [#allocation11], %s1447_s7 }
  0x60   : > { %s777_s8 = sshll.u32 %s333_s11, 4  ;;  %s779_s16 = sshll.u32 %s775_s12, 4  ;;  %s778_s8 = int_to_ptr.vmem [resolvable:$true] %s777_s8  ;;  %s780_s16 = int_to_ptr.hbm [resolvable:$true] %s779_s16 }
  0x61   : > { %362 = vmatpush.msra.mxu0 %v334_v3  ;;  %s765_s25 = scalar_lea.sflag [#allocation5], %s1444_s6  ;;  %s1194_s1 = sshra.s32 %s780_s16, 4  ;;  %s1195_s1 = int_to_ptr.hbm [resolvable:$true] %s1194_s1 }
  0x62   : > { %919 = vmatmul.msk.f32.vlgmr.msra.gmra.mxu0 %vm343_vm0, %v339_v5  ;;  %s1196_s22 = scalar_lea.hbm %s1195_s1, 8  ;;  %s1200_s30 = scalar_lea.hbm %s1561_s5, 16 }
  0x63   : > { %p1197_p11 = scmp.ne.s32.totalorder %s1195_s1, %s1196_s22  ;;  %p1201_p1 = scmp.lt.s32.totalorder %s1195_s1, %s1561_s5 }
  0x64   : > { %p1202_p2 = scmp.lt.s32.totalorder %s1200_s30, %s1196_s22 }
  0x65   : > { %1021 = vrot.lane.b32.xlu0 %v1020_v6, %s1259_s3  ;;  %p1198_p13 = pnand %p1197_p11, %p1336_p6 }
  0x66   : > { %1026 = vrot.lane.b32.xlu1 %v1015_v2, %s1260_s17  ;;  %p1203_p3 = por %p1202_p2, %p1201_p1 }
  0x67   : > { %p1199_p9 = pneg %p1198_p13 }
  0x69   : > { %p1204_p8 = pnand %p1203_p3, %p1199_p9 }
  0xb8   : > { %v1032_v20 = vpop.permute.xlu2 %1031 }
  0xb9   : > { %v1033_v23 = vunpack.i.l.bf16 %v1032_v20  ;;  %v1034_v24 = vunpack.i.h.bf16 %v1032_v20 }
  0xcf   : > { %v1017_v8 = vpop.permute.xlu0 %1016 }
  0xd0   : > { %v1018_v9 = vunpack.i.l.bf16 %v1017_v8  ;;  %v1019_v10 = vunpack.i.h.bf16 %v1017_v8  ;;  %v385_v18 = vpop.permute.xlu1 %384 }
  0xd2   : > { %402 = vmatpush.msra.mxu1 %v1018_v9 }
  0xd4   : > { %403 = vmatpush.msra.mxu1 %v1019_v10 }
  0xd7   : > { %v1022_v11 = vpop.permute.xlu0 %1021 }
  0xd8   : > { %v1023_v12 = vunpack.i.l.bf16 %v1022_v11  ;;  %v1024_v13 = vunpack.i.h.bf16 %v1022_v11  ;;  %v1027_v19 = vpop.permute.xlu1 %1026 }
  0xd9   : > { %v1028_v21 = vunpack.i.l.bf16 %v1027_v19  ;;  %v1029_v22 = vunpack.i.h.bf16 %v1027_v19 }
  0xda   : > { %404 = vmatpush.msra.mxu1 %v1023_v12 }
  0xdb   : > { %441 = vmatpush.msra.mxu2 %v1028_v21 }
  0xdc   : > { %405 = vmatpush.msra.mxu1 %v1024_v13 }
  0xdd   : > { %920 = vmatmul.msk.f32.vlgmr.msra.gmra.mxu1 %vm343_vm0, %v367_v14  ;;  %442 = vmatpush.msra.mxu2 %v1029_v22 }
  0xdf   : > { %v364_v15 = vpop.f32.mrf.mxu0  ;;  %443 = vmatpush.msra.mxu2 %v1033_v23 }
  0xe0   : > { %v365_v16 = vadd.f32 %v1470_v7, %v364_v15 }
  0xe1   : > { %444 = vmatpush.msra.mxu2 %v1034_v24 }
  0xe2   : > { %v449_v17 = vmul.f32 0.35355338, %v365_v16  ;;  %921 = vmatmul.msk.f32.vlgmr.msra.gmra.mxu2 %vm343_vm0, %v410_v25 }
  0xe4   : > { %602 = vrot.lane.b32.xlu0 %v449_v17, %s1261_s15 }
 0x156   : > { %v603_v29 = vpop.permute.xlu0 %602 }
 0x15a   : > { %v407_v26 = vpop.f32.mrf.mxu1 }
 0x15b   : > { %v408_v27 = vadd.f32 %v407_v26, %v385_v18 }
 0x15d   : > { %523 = vrot.lane.b32.xlu1 %v408_v27, %s1262_s26  ;;  %604 = vrot.lane.b32.xlu2 %v408_v27, %s1261_s15 }
 0x15e   : > { %922 = vmatpush.xpose.msk.msra.mxu3 %vm450_vm1, %v408_v27  ;;  %684 = vrot.lane.b32.xlu0 %v408_v27, %s1263_s21 }
 0x161   : > { %923 = vmatmul.msk.f32.vlgmr.msra.gmra.mxu3 %vm450_vm1, %v449_v17 }
 0x165   : > { %682 = vrot.lane.b32.xlu1 %v449_v17, %s1263_s21  ;;  %521 = vrot.lane.b32.xlu2 %v449_v17, %s1262_s26  ;;  %v1497_v36 = vpop.f32.mrf.mxu2 }
 0x1b7   : > { %v605_v28 = vpop.permute.xlu2 %604 }
 0x1b8   : > { %928 = vmatpush.xpose.msk.msrb.mxu2 %vm450_vm1, %v605_v28 }
 0x1bb   : > { %929 = vmatmul.msk.f32.vlgmr.msrb.gmra.mxu2 %vm450_vm1, %v603_v29 }
 0x1bf   : > { %v522_v32 = vpop.permute.xlu2 %521 }
 0x1cf   : > { %v524_v30 = vpop.permute.xlu1 %523 }
 0x1d0   : > { %v685_v31 = vpop.permute.xlu0 %684  ;;  %925 = vmatpush.xpose.msk.msrb.mxu0 %vm450_vm1, %v524_v30 }
 0x1d3   : > { %926 = vmatmul.msk.f32.vlgmr.msrb.gmra.mxu0 %vm450_vm1, %v522_v32 }
 0x1d4   : > { %931 = vmatpush.xpose.msk.msra.mxu0 %vm450_vm1, %v685_v31 }
 0x1d7   : > { %v683_v33 = vpop.permute.xlu1 %682 }
 0x1db   : > { %932 = vmatmul.msk.f32.vlgmr.msra.gmra.mxu0 %vm450_vm1, %v683_v33 }
 0x1e4   : > { %v474_v34 = vpop.f32.mrf.mxu3 }
 0x1e5   : > { %v477_v35 = vsel %vm450_vm1, %v474_v34, -inf }
 0x1e6   : > { %478 = vmax.xlane.f32.xlu2 %v477_v35 }
 0x23e   : > { %v627_v37 = vpop.f32.mrf.mxu2 }
 0x23f   : > { %v630_v38 = vsel %vm450_vm1, %v627_v37, -inf }
 0x240   : > { %631 = vmax.xlane.f32.xlu1 %v630_v38 }
 0x250   : > { %v546_v39 = vpop.f32.mrf.mxu0 }
 0x251   : > { %v549_v40 = vsel %vm450_vm1, %v546_v39, -inf }
 0x252   : > { %550 = vmax.xlane.f32.xlu0 %v549_v40 }
 0x258   : > { %v707_v41 = vpop.f32.mrf.mxu0 }
 0x259   : > { %v479_v42 = vpop.xlane.xlu2 %478  ;;  %v710_v43 = vsel %vm450_vm1, %v707_v41, -inf }
 0x25a   : > { %v480_v44 = vsub.f32 %v474_v34, %v479_v42  ;;  %711 = vmax.xlane.f32.xlu2 %v710_v43 }
 0x25c   : > { %v481_v45 = vmul.f32 100.0, %v480_v44  ;;  %v489_v1 = vmul.f32 1.442695, %v480_v44 }
 0x25e   : > { %v482_v46 = vmul.f32 1.442695, %v481_v45 }
 0x260   : > { %1036 = vpow2.f32 %v482_v46 }
 0x266   : > { %v1037_v47 = vpop.eup %1036 }
 0x267   : > { %v484_v48 = vsel %vm450_vm1, %v1037_v47, 0.0 }
 0x268   : > { %485 = vadd.xlane.f32.xlu2 %v484_v48 }
 0x2b3   : > { %v632_v49 = vpop.xlane.xlu1 %631 }
 0x2b4   : > { %v633_v50 = vsub.f32 %v627_v37, %v632_v49 }
 0x2b6   : > { %v634_v51 = vmul.f32 100.0, %v633_v50  ;;  %v642_v10 = vmul.f32 1.442695, %v633_v50 }
 0x2b8   : > { %v635_v52 = vmul.f32 1.442695, %v634_v51 }
 0x2ba   : > { %1038 = vpow2.f32 %v635_v52 }
 0x2c0   : > { %v1039_v53 = vpop.eup %1038 }
 0x2c1   : > { %v637_v54 = vsel %vm450_vm1, %v1039_v53, 0.0 }
 0x2c2   : > { %638 = vadd.xlane.f32.xlu1 %v637_v54 }
 0x2c5   : > { %v551_v55 = vpop.xlane.xlu0 %550 }
 0x2c6   : > { %v552_v56 = vsub.f32 %v546_v39, %v551_v55 }
 0x2c8   : > { %v553_v57 = vmul.f32 100.0, %v552_v56  ;;  %v561_v16 = vmul.f32 1.442695, %v552_v56 }
 0x2ca   : > { %v554_v58 = vmul.f32 1.442695, %v553_v57 }
 0x2cc   : > { %1040 = vpow2.f32 %v554_v58 }
 0x2cd   : > { %v712_v59 = vpop.xlane.xlu2 %711 }
 0x2ce   : > { %v713_v60 = vsub.f32 %v707_v41, %v712_v59 }
 0x2d0   : > { %v714_v61 = vmul.f32 100.0, %v713_v60  ;;  %v722_v18 = vmul.f32 1.442695, %v713_v60 }
 0x2d2   : > { %v1041_v62 = vpop.eup %1040  ;;  %v715_v63 = vmul.f32 1.442695, %v714_v61 }
 0x2d3   : > { %v556_v0 = vsel %vm450_vm1, %v1041_v62, 0.0 }
 0x2d4   : > { %1042 = vpow2.f32 %v715_v63  ;;  %557 = vadd.xlane.f32.xlu0 %v556_v0 }
 0x2d5   : > { %1044 = vpow2.f32 %v489_v1 }
 0x2d6   : > { %1046 = vpow2.f32 %v642_v10 }
 0x2d7   : > { %1048 = vpow2.f32 %v561_v16 }
 0x2d8   : > { %1050 = vpow2.f32 %v722_v18 }
 0x2da   : > { %v1043_v2 = vpop.eup %1042 }
 0x2db   : > { %v486_v3 = vpop.xlane.xlu2 %485  ;;  %v717_v4 = vsel %vm450_vm1, %v1043_v2, 0.0  ;;  %v1045_v6 = vpop.eup %1044 }
 0x2dc   : > { %v487_v5 = vmul.f32 0.019, %v486_v3  ;;  %718 = vadd.xlane.f32.xlu2 %v717_v4  ;;  %v1047_v13 = vpop.eup %1046 }
 0x2dd   : > { %v1049_v20 = vpop.eup %1048 }
 0x2de   : > { %vm488_vm2 = vcmp.ge.f32.partialorder %v1037_v47, %v487_v5  ;;  %v1051_v24 = vpop.eup %1050 }
 0x2df   : > { %v491_v8 = vsel %vm488_vm2, %v1045_v6, 0.0 }
 0x2e0   : > { %v492_v9 = vsel %vm450_vm1, %v491_v8, 0.0 }
 0x2e1   : > { %493 = vadd.xlane.f32.xlu1 %v492_v9 }
 0x2e8   : > { %423 = vrot.lane.b32.xlu0 %v1470_v7, %s1260_s17 }
 0x335   : > { %v639_v11 = vpop.xlane.xlu1 %638 }
 0x336   : > { %v640_v12 = vmul.f32 0.019, %v639_v11 }
 0x338   : > { %vm641_vm3 = vcmp.ge.f32.partialorder %v1039_v53, %v640_v12 }
 0x339   : > { %v644_v14 = vsel %vm641_vm3, %v1047_v13, 0.0 }
 0x33a   : > { %v645_v15 = vsel %vm450_vm1, %v644_v14, 0.0 }
 0x33b   : > { %646 = vadd.xlane.f32.xlu1 %v645_v15 }
 0x347   : > { %v558_v17 = vpop.xlane.xlu0 %557 }
 0x348   : > { %v559_v19 = vmul.f32 0.019, %v558_v17 }
 0x34a   : > { %vm560_vm4 = vcmp.ge.f32.partialorder %v1041_v62, %v559_v19 }
 0x34b   : > { %v563_v21 = vsel %vm560_vm4, %v1049_v20, 0.0 }
 0x34c   : > { %v564_v7 = vsel %vm450_vm1, %v563_v21, 0.0 }
 0x34d   : > { %565 = vadd.xlane.f32.xlu2 %v564_v7 }
 0x34f   : > { %v719_v22 = vpop.xlane.xlu2 %718 }
 0x350   : > { %v720_v23 = vmul.f32 0.019, %v719_v22 }
 0x352   : > { %vm721_vm5 = vcmp.ge.f32.partialorder %v1043_v2, %v720_v23 }
 0x353   : > { %v724_v25 = vsel %vm721_vm5, %v1051_v24, 0.0 }
 0x354   : > { %v494_v26 = vpop.xlane.xlu1 %493  ;;  %v725_v27 = vsel %vm450_vm1, %v724_v25, 0.0 }
 0x355   : > { %1052 = vrcp.f32 %v494_v26  ;;  %726 = vadd.xlane.f32.xlu2 %v725_v27 }
 0x35a   : > { %v424_v28 = vpop.permute.xlu0 %423 }
 0x35b   : > { %v1053_v29 = vpop.eup %1052  ;;  %v447_v30 = vadd.f32 %v1497_v36, %v424_v28 }
 0x35c   : > { %v496_v31 = vmul.f32 %v1053_v29, %v491_v8 }
 0x35d   : > { %650 = vrot.lane.b32.xlu0 %v447_v30, %s1261_s15  ;;  %515 = vmatpush.msrb.mxu3 %v447_v30 }
 0x35e   : > { %570 = vrot.lane.b32.xlu1 %v447_v30, %s1262_s26  ;;  %924 = vmatmul.msk.f32.vlgmr.msrb.gmra.mxu3 %vm450_vm1, %v496_v31 }
 0x36d   : > { %730 = vrot.lane.b32.xlu2 %v447_v30, %s1263_s21 }
 0x3ae   : > { %v647_v33 = vpop.xlane.xlu1 %646 }
 0x3af   : > { %1054 = vrcp.f32 %v647_v33 }
 0x3b5   : > { %v1055_v35 = vpop.eup %1054 }
 0x3b6   : > { %v649_v38 = vmul.f32 %v1055_v35, %v644_v14 }
 0x3c0   : > { %v566_v32 = vpop.xlane.xlu2 %565 }
 0x3c1   : > { %1056 = vrcp.f32 %v566_v32 }
 0x3c7   : > { %v1057_v37 = vpop.eup %1056 }
 0x3c8   : > { %v727_v34 = vpop.xlane.xlu2 %726  ;;  %v568_v41 = vmul.f32 %v1057_v37, %v563_v21 }
 0x3c9   : > { %1058 = vrcp.f32 %v727_v34 }
 0x3cf   : > { %v651_v36 = vpop.permute.xlu0 %650  ;;  %v1059_v42 = vpop.eup %1058 }
 0x3d0   : > { %v571_v39 = vpop.permute.xlu1 %570  ;;  %671 = vmatpush.msra.mxu3 %v651_v36  ;;  %v731_v40 = vpop.permute.xlu2 %730  ;;  %v729_v43 = vmul.f32 %v1059_v42, %v724_v25 }
 0x3d1   : > { %591 = vmatpush.msrb.mxu1 %v571_v39  ;;  %930 = vmatmul.msk.f32.vlgmr.msra.gmra.mxu3 %vm450_vm1, %v649_v38 }
 0x3d2   : > { %927 = vmatmul.msk.f32.vlgmr.msrb.gmra.mxu1 %vm450_vm1, %v568_v41 }
 0x3d3   : > { %751 = vmatpush.msra.mxu1 %v731_v40 }
 0x3da   : > { %933 = vmatmul.msk.f32.vlgmr.msra.gmra.mxu1 %vm450_vm1, %v729_v43 }
 0x3e1   : > { %v517_v44 = vpop.f32.mrf.mxu3 }
 0x3e2   : > { %520 = vst.msk [vmem:[#allocation2] sm:$0xff] %vm450_vm1, %v517_v44 }
 0x44f   : > { %v593_v45 = vpop.f32.mrf.mxu1 }
 0x450   : > { %597 = vrot.lane.b32.xlu0 %v593_v45, %s1264_s24 }
 0x454   : > { %v673_v46 = vpop.f32.mrf.mxu3 }
 0x457   : > { %v753_v47 = vpop.f32.mrf.mxu1 }
 0x458   : > { %677 = vrot.lane.b32.xlu0 %v673_v46, %s1265_s27  ;;  %757 = vrot.lane.b32.xlu1 %v753_v47, %s1266_s10 }
 0x4c2   : > { %v598_v48 = vpop.permute.xlu0 %597 }
 0x4c3   : > { %601 = vst.msk [vmem:[#allocation2] sm:$0xff] %vm600_vm6, %v598_v48 }
 0x4ca   : > { %v678_v49 = vpop.permute.xlu0 %677  ;;  %v758_v50 = vpop.permute.xlu1 %757 }
 0x4cb   : > { %681 = vst.msk [vmem:[#allocation2] sm:$0xff] %vm680_vm7, %v678_v49 }
 0x4cc   : > { %761 = vst.msk [vmem:[#allocation2] sm:$0xff] %vm760_vm8, %v758_v50 }
 0x4d3   : > { %v762_v51 = vld [vmem:[#allocation2] sm:$0xff] }
 0x4d4   : > { %763 = vst.msk [vmem:[%s333_s11] sm:$0xff] %vm343_vm0, %v762_v51 }
 0x4d5   : > { %1207 = shalt.err (!%p1204_p8)
}
 0x4d6   : > { %948 = dma.vmem_to_hbm [thread:$0]  (%p1336_p6), %s778_s8, 128, %s780_s16, %s765_s25  }
 0x4d7 PF: > { %s1579_s6 = sld [smem:[#allocation16_spill]]  ;;  %s791_s15 = sand.u32 1, %s1242_s18  }
 0x4d8   : > { %s792_s26 = scalar_lea.sflag [#allocation5], %s791_s15 }
 0x4dd   : > { %p1580_p7 = scmp.ge.s32.totalorder %s1579_s6, 2 }
 0x4df   : > { %p965_p12 = pnand %p1580_p7, %p1345_p10 }
 0x4e1   : > { %p966_p0 = pneg %p965_p12 }
 0x4e3   : > { %1237 = dma.done.wait (%p966_p0), %s792_s26, 128  }
 0x4e4   : > { %1239 = vsyncadd (%p966_p0), %s792_s26, 4294967168  ;;  %s1581_s21 = sld [smem:[#allocation17_spill]]  ;;  %s1583_s18 = smov %s1246_s19 }
 0x4e5   : > { %s1582_s24 = sld [smem:[#allocation18_spill]]  ;;  %s1584_s19 = smov %s1250_s20 }
 0x4ea   : > { %p22_p4 = scmp.ge.s32.totalorder %s1581_s21, 4  }
 0x4eb   : > { %s1585_s20 = smov %s1582_s24 }
 0x4ec   :  { %24 = sbr.rel (!%p22_p4) target bundleno = 11 (0xb), region = 113 }
 0x4f1   :  { %798 = vsyncpa [#allocation4], 1 }
 0x4f2   :  { %800 = vsyncpa [#allocation4 + $0x1], 1 }
 0x4f3   :  { %801 = vsyncpa [#allocation7], 1 }
 0x4f4   :  { %803 = vsyncpa [#allocation7 + $0x1], 1 }
 0x4f5   :  { %804 = vsyncpa [#allocation10], 1 }
 0x4f6   :  { %805 = vsyncpa [#allocation5], 1 }
 0x4f7   :  { %807 = vsyncpa [#allocation5 + $0x1], 1 }

// kernel: tpu_custom_call.1
= control target key start
LH: loop header
LB: loop body
LE: loop exit
PB: predicated region body
PF: predicated region fallthrough
CT: control target
= control target key end

     0   :  { %s1556_s0 = inlined_call_operand.hbm [shape: f32[2,8,32], index: 0, kind: input, shape index: {}]   ;;  %s1557_s1 = inlined_call_operand.hbm [shape: f32[2,8,32], index: 1, kind: input, shape index: {}]   ;;  %s1558_s2 = inlined_call_operand.hbm [shape: f32[2,8,32], index: 2, kind: input, shape index: {}]   ;;  %s1559_s3 = inlined_call_operand.hbm [shape: f32[32,96], index: 3, kind: input, shape index: {}]   ;;  %s1560_s4 = inlined_call_operand.vmem [shape: f32[1,96], index: 4, kind: input, shape index: {}]   ;;  %s1561_s5 = inlined_call_operand.hbm [shape: f32[2,8,32], index: 5, kind: output, shape index: {}]  }
   0x1   :  { %1566 = sst [smem:[#allocation19_spill]] %s1557_s1 }
   0x2   :  { %1567 = sst [smem:[#allocation20_spill]] %s1559_s3 }
   0x3   :  { %10 = vsyncpa [#allocation4], 0 }
   0x4   :  { %12 = vsyncpa [#allocation4 + $0x1], 0 }
   0x5   :  { %13 = vsyncpa [#allocation7], 0 }
   0x6   :  { %15 = vsyncpa [#allocation7 + $0x1], 0 }
   0x7   :  { %16 = vsyncpa [#allocation10], 0 }
   0x8   :  { %17 = vsyncpa [#allocation5], 0 }
   0x9   :  { %19 = vsyncpa [#allocation5 + $0x1], 0  ;;  %s1297_s18 = smov 0   ;;  %s1299_s19 = smov 0  }
   0xa   :  { %s1301_s20 = smov 0   ;;  %s1303_s21 = smov 0  }
   0xb LB: > { %1568 = sst [smem:[#allocation16_spill]] %s1254_s21  ;;  %s1318_s22 = sadd.s32 4294967295, %s1254_s21   ;;  %s1254_s21 = sphi %s1303_s21, %s1581_s21   ;;  %s1250_s20 = sphi %s1301_s20, %s1585_s20   ;;  %s1246_s19 = sphi %s1299_s19, %s1584_s19   ;;  %s1242_s18 = sphi %s1297_s18, %s1583_s18  }
   0xc   : > { %s903_s23 = sadd.s32 4294967294, %s1254_s21   ;;  %s1322_s24 = sadd.s32 1, %s1254_s21  }
   0xd   : > { %1569 = sst [smem:[#allocation17_spill]] %s1322_s24  ;;  %s32_s25 = sadd.s32 1, %s1250_s20 }
   0xe   : > { %s29_s26 = ssub.s32 %s1254_s21, %s1322_s24  ;;  %p39_p0 = scmp.ne.s32.totalorder %s1250_s20, %s1246_s19 }
   0xf   : > { %p30_p1 = scmp.eq.s32.totalorder %s29_s26, 0  ;;  %p40_p2 = scmp.eq.s32.totalorder %s1254_s21, 0 }
  0x10   : > { %p45_p3 = scmp.ne.s32.totalorder %s1246_s19, %s1242_s18  ;;  %p163_p4 = scmp.eq.s32.totalorder %s1318_s22, 1 }
  0x11   : > { %s1334_s27 = scalar_select %p30_p1, %s1250_s20, %s32_s25  }
  0x12   : > { %p41_p5 = por %p40_p2, %p39_p0  ;;  %p1336_p6 = por %p163_p4, %p39_p0 }
  0x13   : > { %1570 = sst [smem:[#allocation18_spill]] %s1334_s27  ;;  %p169_p7 = scmp.eq.s32.totalorder %s903_s23, 1 }
  0x14   : > { %p969_p9 = scmp.lt.s32.totalorder %s1254_s21, 2  ;;  %s1562_s30 = sand.u32 1, %s1250_s20  }
  0x15   : > { %p1345_p10 = por %p169_p7, %p45_p3  ;;  %s1352_s6 = sshll.u32 %s1562_s30, 3 }
  0x16   : > { %s1355_s7 = sshll.u32 %s1254_s21, 3  ;;  %p1357_p11 = pnand %p969_p9, %p41_p5 }
  0x17   : > { %s225_s9 = sand.u32 1, %s1254_s21   ;;  %s1574_s1 = sld [smem:[#allocation19_spill]] }
  0x18   : > { %s229_s14 = scalar_lea.vmem [#allocation6], %s1352_s6  ;;  %s1367_s16 = scalar_lea.sflag [#allocation7], %s225_s9 }
  0x19   : > { %s237_s15 = sshll.u32 %s229_s14, 4  ;;  %p1064_p13 = pneg %p1357_p11  ;;  %s238_s15 = int_to_ptr.vmem [resolvable:$true] %s237_s15 }
  0x1d   : > { %s233_s12 = scalar_lea.hbm %s1574_s1, %s1355_s7  ;;  %s1067_s10 = scalar_lea.hbm %s1574_s1, 16 }
  0x1e   : > { %s235_s13 = sshll.u32 %s233_s12, 4  ;;  %s236_s13 = int_to_ptr.hbm [resolvable:$true] %s235_s13 }
  0x1f   : > { %s1060_s17 = sshra.s32 %s236_s13, 4  ;;  %s1061_s17 = int_to_ptr.hbm [resolvable:$true] %s1060_s17 }
  0x20   : > { %s1062_s23 = scalar_lea.hbm %s1061_s17, 8  ;;  %p1068_p2 = scmp.lt.s32.totalorder %s1061_s17, %s1574_s1 }
  0x21   : > { %p1063_p12 = scmp.ne.s32.totalorder %s1061_s17, %s1062_s23  ;;  %p1069_p4 = scmp.lt.s32.totalorder %s1067_s10, %s1062_s23 }
  0x23   : > { %p1065_p0 = pnand %p1064_p13, %p1063_p12  ;;  %p1070_p5 = por %p1069_p4, %p1068_p2 }
  0x25   : > { %p1066_p1 = pneg %p1065_p0 }
  0x27   : > { %p1071_p7 = pnand %p1070_p5, %p1066_p1 }
  0x29   : > { %1074 = shalt.err (!%p1071_p7)
}
  0x2a   : > { %960 = dma.hbm_to_vmem [thread:$0]  (!%p1357_p11), %s236_s13, 128, %s238_s15, %s1367_s16  }
  0x2b   : > { %p46_p9 = scmp.eq.s32.totalorder %s1318_s22, 0  ;;  %p904_p12 = scmp.ge.s32.totalorder %s1254_s21, 1 }
  0x2c   : > { %p176_p0 = scmp.lt.s32.totalorder %s1254_s21, 3  ;;  %s1575_s3 = sld [smem:[#allocation20_spill]] }
  0x2d   : > { %p1394_p1 = por %p46_p9, %p45_p3  ;;  %s1256_s13 = smov [#allocation9]  }
  0x2e   : > { %p1398_p2 = pnand %p904_p12, %p176_p0  ;;  %s189_s15 = sshll.u32 %s1256_s13, 4  ;;  %s190_s15 = int_to_ptr.vmem [resolvable:$true] %s189_s15 }
  0x2f   : > { %s214_s11 = scalar_lea.hbm %s1556_s0, %s1355_s7  ;;  %s210_s12 = scalar_lea.vmem [#allocation3], %s1352_s6 }
  0x30   : > { %p950_p4 = pneg %p1398_p2  ;;  %s218_s9 = sshll.u32 %s210_s12, 4  ;;  %s219_s9 = int_to_ptr.vmem [resolvable:$true] %s218_s9 }
  0x31   : > { %s216_s14 = sshll.u32 %s214_s11, 4  ;;  %s1257_s30 = smov 128   ;;  %s217_s14 = int_to_ptr.hbm [resolvable:$true] %s216_s14 }
  0x32   : > { %s187_s17 = sshll.u32 %s1575_s3, 4  ;;  %p951_p5 = pnand %p950_p4, %p46_p9  ;;  %s188_s17 = int_to_ptr.hbm [resolvable:$true] %s187_s17 }
  0x33   : > { %s1258_s1 = smov 8   ;;  %s1578_s3 = sand.u32 1, %s1250_s20  }
  0x34   : > { %953 = dma.hbm_to_vmem [thread:$0]  (!%p951_p5), %s188_s17, 512, %s190_s15, [#allocation10], %s1257_s30, %s1257_s30, %s1258_s1  }
  0x35   : > { %s207_s13 = scalar_lea.sflag [#allocation4], %s1578_s3  ;;  %s1120_s27 = sshra.s32 %s217_s14, 4  ;;  %s1121_s27 = int_to_ptr.hbm [resolvable:$true] %s1120_s27 }
  0x36   : > { %s1122_s24 = scalar_lea.hbm %s1121_s27, 8  ;;  %s1127_s12 = scalar_lea.hbm %s1556_s0, 16 }
  0x37   : > { %p1123_p3 = scmp.ne.s32.totalorder %s1121_s27, %s1122_s24  ;;  %p1128_p0 = scmp.lt.s32.totalorder %s1121_s27, %s1556_s0 }
  0x38   : > { %p1129_p4 = scmp.lt.s32.totalorder %s1127_s12, %s1122_s24 }
  0x39   : > { %p1125_p7 = pnand %p1123_p3, %p1064_p13 }
  0x3a   : > { %p1130_p5 = por %p1129_p4, %p1128_p0 }
  0x3b   : > { %p1126_p12 = pneg %p1125_p7 }
  0x3d   : > { %p1131_p8 = pnand %p1130_p5, %p1126_p12 }
  0x3f   : > { %1134 = shalt.err (!%p1131_p8)
}
  0x40   : > { %957 = dma.hbm_to_vmem [thread:$0]  (!%p1357_p11), %s217_s14, 128, %s219_s9, %s207_s13  }
  0x41   : > { %s252_s30 = scalar_lea.hbm %s1558_s2, %s1355_s7  ;;  %s248_s15 = scalar_lea.vmem [#allocation8], %s1352_s6 }
  0x42   : > { %s254_s17 = sshll.u32 %s252_s30, 4  ;;  %s256_s26 = sshll.u32 %s248_s15, 4  ;;  %s255_s17 = int_to_ptr.hbm [resolvable:$true] %s254_s17  ;;  %s257_s26 = int_to_ptr.vmem [resolvable:$true] %s256_s26 }
  0x43   : > { %s1150_s21 = sshra.s32 %s255_s17, 4  ;;  %s1157_s9 = scalar_lea.hbm %s1558_s2, 16  ;;  %s1151_s21 = int_to_ptr.hbm [resolvable:$true] %s1150_s21 }
  0x44   : > { %s1152_s24 = scalar_lea.hbm %s1151_s21, 8  ;;  %p1158_p12 = scmp.lt.s32.totalorder %s1151_s21, %s1558_s2 }
  0x45   : > { %p1153_p3 = scmp.ne.s32.totalorder %s1151_s21, %s1152_s24  ;;  %p1159_p0 = scmp.lt.s32.totalorder %s1157_s9, %s1152_s24 }
  0x47   : > { %p1155_p8 = pnand %p1153_p3, %p1064_p13  ;;  %p1160_p4 = por %p1159_p0, %p1158_p12 }
  0x49   : > { %p1156_p7 = pneg %p1155_p8 }
  0x4b   : > { %p1161_p5 = pnand %p1160_p4, %p1156_p7 }
  0x4d   : > { %1164 = shalt.err (!%p1161_p5)
}
  0x4e   : > { %963 = dma.hbm_to_vmem [thread:$0]  (!%p1357_p11), %s255_s17, 128, %s257_s26, %s1367_s16  }
  0x4f   : > { %265 = sbr.rel (%p1398_p2) target bundleno = 1239 (0x4d7), region = 40  ;;  %s1444_s6 = sand.u32 (!%p1398_p2), 1, %s1246_s19  }
  0x50   : > { %s1447_s7 = sshll.u32 (!%p1398_p2), %s1444_s6, 3  ;;  %s268_s12 = scalar_lea.sflag (!%p1398_p2), [#allocation4], %s1444_s6 }
  0x51   : > { %s271_s11 = scalar_lea.vmem (!%p1398_p2), [#allocation3], %s1447_s7 }
  0x54   : > { %1225 = dma.done.wait (%p1394_p1), %s268_s12, 128  }
  0x55   : > { %1227 = vsyncadd (%p1394_p1), %s268_s12, 4294967168  ;;  %s277_s8 = sand.u32 1, %s1318_s22   ;;  %s281_s25 = scalar_lea.vmem [#allocation6], %s1447_s7 }
  0x56   : > { %s278_s16 = scalar_lea.sflag [#allocation7], %s277_s8 }
  0x57   : > { %1229 = dma.done.wait (%p1394_p1), %s278_s16, 256  }
  0x58   : > { %1231 = vsyncadd (%p1394_p1), %s278_s16, 4294967040  ;;  %s291_s1 = scalar_lea.vmem [#allocation8], %s1447_s7 }
  0x59   : > { %1233 = dma.done.wait (%p46_p9), [#allocation10], 512  }
  0x5a   : > { %1235 = vsyncadd (%p46_p9), [#allocation10], 4294966784  ;;  %v336_v0 = vld [vmem:[#allocation9 + $0x10] sm:$0xff]  ;;  %v337_v1 = vld [vmem:[#allocation9 + $0x18] sm:$0xff]  ;;  %s1259_s3 = smov 96   ;;  %vm343_vm0 = vcmask 261120  }
  0x5b   : > { %v1015_v2 = vpack.i.bf16 %v336_v0, %v337_v1  ;;  %359 = vmatpush.msra.mxu0 %v337_v1  ;;  %v334_v3 = vld [vmem:[#allocation9] sm:$0xff]  ;;  %v335_v4 = vld [vmem:[#allocation9 + $0x8] sm:$0xff]  ;;  %v339_v5 = vld [vmem:[%s271_s11] sm:$0xff]  ;;  %s1260_s17 = smov 64   ;;  %s1261_s15 = smov 112   ;;  %vm450_vm1 = vcmask 64512  }
  0x5c   : > { %v1020_v6 = vpack.i.bf16 %v334_v3, %v335_v4  ;;  %v1470_v7 = vld [vmem:[%s1560_s4] ss:$0 sm:$0xff]  ;;  %v410_v25 = vld [vmem:[%s291_s1] sm:$0xff]  ;;  %s1262_s26 = smov 120   ;;  %s1263_s21 = smov 104   ;;  %vm600_vm6 = vcmask 130112  }
  0x5d   : > { %1016 = vrot.lane.b32.xlu0 %v1015_v2, %s1259_s3  ;;  %360 = vmatpush.msra.mxu0 %v336_v0  ;;  %v367_v14 = vld [vmem:[%s281_s25] sm:$0xff]  ;;  %s1264_s24 = smov 8   ;;  %s1265_s27 = smov 16   ;;  %vm680_vm7 = vcmask 195712   ;;  %vm760_vm8 = vcmask 261312  }
  0x5e   : > { %384 = vrot.lane.b32.xlu1 %v1470_v7, %s1259_s3  ;;  %1031 = vrot.lane.b32.xlu2 %v1020_v6, %s1260_s17  ;;  %s1266_s10 = smov 24   ;;  %s935_s9 = sshll.u32 %s1318_s22, 3 }
  0x5f   : > { %361 = vmatpush.msra.mxu0 %v335_v4  ;;  %s775_s12 = scalar_lea.hbm %s1561_s5, %s935_s9  ;;  %s333_s11 = scalar_lea.vmem [#allocation11], %s1447_s7 }
  0x60   : > { %s777_s8 = sshll.u32 %s333_s11, 4  ;;  %s779_s16 = sshll.u32 %s775_s12, 4  ;;  %s778_s8 = int_to_ptr.vmem [resolvable:$true] %s777_s8  ;;  %s780_s16 = int_to_ptr.hbm [resolvable:$true] %s779_s16 }
  0x61   : > { %362 = vmatpush.msra.mxu0 %v334_v3  ;;  %s765_s25 = scalar_lea.sflag [#allocation5], %s1444_s6  ;;  %s1194_s1 = sshra.s32 %s780_s16, 4  ;;  %s1195_s1 = int_to_ptr.hbm [resolvable:$true] %s1194_s1 }
  0x62   : > { %919 = vmatmul.msk.f32.vlgmr.msra.gmra.mxu0 %vm343_vm0, %v339_v5  ;;  %s1196_s22 = scalar_lea.hbm %s1195_s1, 8  ;;  %s1200_s30 = scalar_lea.hbm %s1561_s5, 16 }
  0x63   : > { %p1197_p11 = scmp.ne.s32.totalorder %s1195_s1, %s1196_s22  ;;  %p1201_p1 = scmp.lt.s32.totalorder %s1195_s1, %s1561_s5 }
  0x64   : > { %p1202_p2 = scmp.lt.s32.totalorder %s1200_s30, %s1196_s22 }
  0x65   : > { %1021 = vrot.lane.b32.xlu0 %v1020_v6, %s1259_s3  ;;  %p1198_p13 = pnand %p1197_p11, %p1336_p6 }
  0x66   : > { %1026 = vrot.lane.b32.xlu1 %v1015_v2, %s1260_s17  ;;  %p1203_p3 = por %p1202_p2, %p1201_p1 }
  0x67   : > { %p1199_p9 = pneg %p1198_p13 }
  0x69   : > { %p1204_p8 = pnand %p1203_p3, %p1199_p9 }
  0xb8   : > { %v1032_v20 = vpop.permute.xlu2 %1031 }
  0xb9   : > { %v1033_v23 = vunpack.i.l.bf16 %v1032_v20  ;;  %v1034_v24 = vunpack.i.h.bf16 %v1032_v20 }
  0xcf   : > { %v1017_v8 = vpop.permute.xlu0 %1016 }
  0xd0   : > { %v1018_v9 = vunpack.i.l.bf16 %v1017_v8  ;;  %v1019_v10 = vunpack.i.h.bf16 %v1017_v8  ;;  %v385_v18 = vpop.permute.xlu1 %384 }
  0xd2   : > { %402 = vmatpush.msra.mxu1 %v1018_v9 }
  0xd4   : > { %403 = vmatpush.msra.mxu1 %v1019_v10 }
  0xd7   : > { %v1022_v11 = vpop.permute.xlu0 %1021 }
  0xd8   : > { %v1023_v12 = vunpack.i.l.bf16 %v1022_v11  ;;  %v1024_v13 = vunpack.i.h.bf16 %v1022_v11  ;;  %v1027_v19 = vpop.permute.xlu1 %1026 }
  0xd9   : > { %v1028_v21 = vunpack.i.l.bf16 %v1027_v19  ;;  %v1029_v22 = vunpack.i.h.bf16 %v1027_v19 }
  0xda   : > { %404 = vmatpush.msra.mxu1 %v1023_v12 }
  0xdb   : > { %441 = vmatpush.msra.mxu2 %v1028_v21 }
  0xdc   : > { %405 = vmatpush.msra.mxu1 %v1024_v13 }
  0xdd   : > { %920 = vmatmul.msk.f32.vlgmr.msra.gmra.mxu1 %vm343_vm0, %v367_v14  ;;  %442 = vmatpush.msra.mxu2 %v1029_v22 }
  0xdf   : > { %v364_v15 = vpop.f32.mrf.mxu0  ;;  %443 = vmatpush.msra.mxu2 %v1033_v23 }
  0xe0   : > { %v365_v16 = vadd.f32 %v1470_v7, %v364_v15 }
  0xe1   : > { %444 = vmatpush.msra.mxu2 %v1034_v24 }
  0xe2   : > { %v449_v17 = vmul.f32 0.35355338, %v365_v16  ;;  %921 = vmatmul.msk.f32.vlgmr.msra.gmra.mxu2 %vm343_vm0, %v410_v25 }
  0xe4   : > { %602 = vrot.lane.b32.xlu0 %v449_v17, %s1261_s15 }
 0x156   : > { %v603_v29 = vpop.permute.xlu0 %602 }
 0x15a   : > { %v407_v26 = vpop.f32.mrf.mxu1 }
 0x15b   : > { %v408_v27 = vadd.f32 %v407_v26, %v385_v18 }
 0x15d   : > { %523 = vrot.lane.b32.xlu1 %v408_v27, %s1262_s26  ;;  %604 = vrot.lane.b32.xlu2 %v408_v27, %s1261_s15 }
 0x15e   : > { %922 = vmatpush.xpose.msk.msra.mxu3 %vm450_vm1, %v408_v27  ;;  %684 = vrot.lane.b32.xlu0 %v408_v27, %s1263_s21 }
 0x161   : > { %923 = vmatmul.msk.f32.vlgmr.msra.gmra.mxu3 %vm450_vm1, %v449_v17 }
 0x165   : > { %682 = vrot.lane.b32.xlu1 %v449_v17, %s1263_s21  ;;  %521 = vrot.lane.b32.xlu2 %v449_v17, %s1262_s26  ;;  %v1497_v36 = vpop.f32.mrf.mxu2 }
 0x1b7   : > { %v605_v28 = vpop.permute.xlu2 %604 }
 0x1b8   : > { %928 = vmatpush.xpose.msk.msrb.mxu2 %vm450_vm1, %v605_v28 }
 0x1bb   : > { %929 = vmatmul.msk.f32.vlgmr.msrb.gmra.mxu2 %vm450_vm1, %v603_v29 }
 0x1bf   : > { %v522_v32 = vpop.permute.xlu2 %521 }
 0x1cf   : > { %v524_v30 = vpop.permute.xlu1 %523 }
 0x1d0   : > { %v685_v31 = vpop.permute.xlu0 %684  ;;  %925 = vmatpush.xpose.msk.msrb.mxu0 %vm450_vm1, %v524_v30 }
 0x1d3   : > { %926 = vmatmul.msk.f32.vlgmr.msrb.gmra.mxu0 %vm450_vm1, %v522_v32 }
 0x1d4   : > { %931 = vmatpush.xpose.msk.msra.mxu0 %vm450_vm1, %v685_v31 }
 0x1d7   : > { %v683_v33 = vpop.permute.xlu1 %682 }
 0x1db   : > { %932 = vmatmul.msk.f32.vlgmr.msra.gmra.mxu0 %vm450_vm1, %v683_v33 }
 0x1e4   : > { %v474_v34 = vpop.f32.mrf.mxu3 }
 0x1e5   : > { %v477_v35 = vsel %vm450_vm1, %v474_v34, -inf }
 0x1e6   : > { %478 = vmax.xlane.f32.xlu2 %v477_v35 }
 0x23e   : > { %v627_v37 = vpop.f32.mrf.mxu2 }
 0x23f   : > { %v630_v38 = vsel %vm450_vm1, %v627_v37, -inf }
 0x240   : > { %631 = vmax.xlane.f32.xlu1 %v630_v38 }
 0x250   : > { %v546_v39 = vpop.f32.mrf.mxu0 }
 0x251   : > { %v549_v40 = vsel %vm450_vm1, %v546_v39, -inf }
 0x252   : > { %550 = vmax.xlane.f32.xlu0 %v549_v40 }
 0x258   : > { %v707_v41 = vpop.f32.mrf.mxu0 }
 0x259   : > { %v479_v42 = vpop.xlane.xlu2 %478  ;;  %v710_v43 = vsel %vm450_vm1, %v707_v41, -inf }
 0x25a   : > { %v480_v44 = vsub.f32 %v474_v34, %v479_v42  ;;  %711 = vmax.xlane.f32.xlu2 %v710_v43 }
 0x25c   : > { %v481_v45 = vmul.f32 100.0, %v480_v44  ;;  %v489_v1 = vmul.f32 1.442695, %v480_v44 }
 0x25e   : > { %v482_v46 = vmul.f32 1.442695, %v481_v45 }
 0x260   : > { %1036 = vpow2.f32 %v482_v46 }
 0x266   : > { %v1037_v47 = vpop.eup %1036 }
 0x267   : > { %v484_v48 = vsel %vm450_vm1, %v1037_v47, 0.0 }
 0x268   : > { %485 = vadd.xlane.f32.xlu2 %v484_v48 }
 0x2b3   : > { %v632_v49 = vpop.xlane.xlu1 %631 }
 0x2b4   : > { %v633_v50 = vsub.f32 %v627_v37, %v632_v49 }
 0x2b6   : > { %v634_v51 = vmul.f32 100.0, %v633_v50  ;;  %v642_v10 = vmul.f32 1.442695, %v633_v50 }
 0x2b8   : > { %v635_v52 = vmul.f32 1.442695, %v634_v51 }
 0x2ba   : > { %1038 = vpow2.f32 %v635_v52 }
 0x2c0   : > { %v1039_v53 = vpop.eup %1038 }
 0x2c1   : > { %v637_v54 = vsel %vm450_vm1, %v1039_v53, 0.0 }
 0x2c2   : > { %638 = vadd.xlane.f32.xlu1 %v637_v54 }
 0x2c5   : > { %v551_v55 = vpop.xlane.xlu0 %550 }
 0x2c6   : > { %v552_v56 = vsub.f32 %v546_v39, %v551_v55 }
 0x2c8   : > { %v553_v57 = vmul.f32 100.0, %v552_v56  ;;  %v561_v16 = vmul.f32 1.442695, %v552_v56 }
 0x2ca   : > { %v554_v58 = vmul.f32 1.442695, %v553_v57 }
 0x2cc   : > { %1040 = vpow2.f32 %v554_v58 }
 0x2cd   : > { %v712_v59 = vpop.xlane.xlu2 %711 }
 0x2ce   : > { %v713_v60 = vsub.f32 %v707_v41, %v712_v59 }
 0x2d0   : > { %v714_v61 = vmul.f32 100.0, %v713_v60  ;;  %v722_v18 = vmul.f32 1.442695, %v713_v60 }
 0x2d2   : > { %v1041_v62 = vpop.eup %1040  ;;  %v715_v63 = vmul.f32 1.442695, %v714_v61 }
 0x2d3   : > { %v556_v0 = vsel %vm450_vm1, %v1041_v62, 0.0 }
 0x2d4   : > { %1042 = vpow2.f32 %v715_v63  ;;  %557 = vadd.xlane.f32.xlu0 %v556_v0 }
 0x2d5   : > { %1044 = vpow2.f32 %v489_v1 }
 0x2d6   : > { %1046 = vpow2.f32 %v642_v10 }
 0x2d7   : > { %1048 = vpow2.f32 %v561_v16 }
 0x2d8   : > { %1050 = vpow2.f32 %v722_v18 }
 0x2da   : > { %v1043_v2 = vpop.eup %1042 }
 0x2db   : > { %v486_v3 = vpop.xlane.xlu2 %485  ;;  %v717_v4 = vsel %vm450_vm1, %v1043_v2, 0.0  ;;  %v1045_v6 = vpop.eup %1044 }
 0x2dc   : > { %v487_v5 = vmul.f32 0.019, %v486_v3  ;;  %718 = vadd.xlane.f32.xlu2 %v717_v4  ;;  %v1047_v13 = vpop.eup %1046 }
 0x2dd   : > { %v1049_v20 = vpop.eup %1048 }
 0x2de   : > { %vm488_vm2 = vcmp.ge.f32.partialorder %v1037_v47, %v487_v5  ;;  %v1051_v24 = vpop.eup %1050 }
 0x2df   : > { %v491_v8 = vsel %vm488_vm2, %v1045_v6, 0.0 }
 0x2e0   : > { %v492_v9 = vsel %vm450_vm1, %v491_v8, 0.0 }
 0x2e1   : > { %493 = vadd.xlane.f32.xlu1 %v492_v9 }
 0x2e8   : > { %423 = vrot.lane.b32.xlu0 %v1470_v7, %s1260_s17 }
 0x335   : > { %v639_v11 = vpop.xlane.xlu1 %638 }
 0x336   : > { %v640_v12 = vmul.f32 0.019, %v639_v11 }
 0x338   : > { %vm641_vm3 = vcmp.ge.f32.partialorder %v1039_v53, %v640_v12 }
 0x339   : > { %v644_v14 = vsel %vm641_vm3, %v1047_v13, 0.0 }
 0x33a   : > { %v645_v15 = vsel %vm450_vm1, %v644_v14, 0.0 }
 0x33b   : > { %646 = vadd.xlane.f32.xlu1 %v645_v15 }
 0x347   : > { %v558_v17 = vpop.xlane.xlu0 %557 }
 0x348   : > { %v559_v19 = vmul.f32 0.019, %v558_v17 }
 0x34a   : > { %vm560_vm4 = vcmp.ge.f32.partialorder %v1041_v62, %v559_v19 }
 0x34b   : > { %v563_v21 = vsel %vm560_vm4, %v1049_v20, 0.0 }
 0x34c   : > { %v564_v7 = vsel %vm450_vm1, %v563_v21, 0.0 }
 0x34d   : > { %565 = vadd.xlane.f32.xlu2 %v564_v7 }
 0x34f   : > { %v719_v22 = vpop.xlane.xlu2 %718 }
 0x350   : > { %v720_v23 = vmul.f32 0.019, %v719_v22 }
 0x352   : > { %vm721_vm5 = vcmp.ge.f32.partialorder %v1043_v2, %v720_v23 }
 0x353   : > { %v724_v25 = vsel %vm721_vm5, %v1051_v24, 0.0 }
 0x354   : > { %v494_v26 = vpop.xlane.xlu1 %493  ;;  %v725_v27 = vsel %vm450_vm1, %v724_v25, 0.0 }
 0x355   : > { %1052 = vrcp.f32 %v494_v26  ;;  %726 = vadd.xlane.f32.xlu2 %v725_v27 }
 0x35a   : > { %v424_v28 = vpop.permute.xlu0 %423 }
 0x35b   : > { %v1053_v29 = vpop.eup %1052  ;;  %v447_v30 = vadd.f32 %v1497_v36, %v424_v28 }
 0x35c   : > { %v496_v31 = vmul.f32 %v1053_v29, %v491_v8 }
 0x35d   : > { %650 = vrot.lane.b32.xlu0 %v447_v30, %s1261_s15  ;;  %515 = vmatpush.msrb.mxu3 %v447_v30 }
 0x35e   : > { %570 = vrot.lane.b32.xlu1 %v447_v30, %s1262_s26  ;;  %924 = vmatmul.msk.f32.vlgmr.msrb.gmra.mxu3 %vm450_vm1, %v496_v31 }
 0x36d   : > { %730 = vrot.lane.b32.xlu2 %v447_v30, %s1263_s21 }
 0x3ae   : > { %v647_v33 = vpop.xlane.xlu1 %646 }
 0x3af   : > { %1054 = vrcp.f32 %v647_v33 }
 0x3b5   : > { %v1055_v35 = vpop.eup %1054 }
 0x3b6   : > { %v649_v38 = vmul.f32 %v1055_v35, %v644_v14 }
 0x3c0   : > { %v566_v32 = vpop.xlane.xlu2 %565 }
 0x3c1   : > { %1056 = vrcp.f32 %v566_v32 }
 0x3c7   : > { %v1057_v37 = vpop.eup %1056 }
 0x3c8   : > { %v727_v34 = vpop.xlane.xlu2 %726  ;;  %v568_v41 = vmul.f32 %v1057_v37, %v563_v21 }
 0x3c9   : > { %1058 = vrcp.f32 %v727_v34 }
 0x3cf   : > { %v651_v36 = vpop.permute.xlu0 %650  ;;  %v1059_v42 = vpop.eup %1058 }
 0x3d0   : > { %v571_v39 = vpop.permute.xlu1 %570  ;;  %671 = vmatpush.msra.mxu3 %v651_v36  ;;  %v731_v40 = vpop.permute.xlu2 %730  ;;  %v729_v43 = vmul.f32 %v1059_v42, %v724_v25 }
 0x3d1   : > { %591 = vmatpush.msrb.mxu1 %v571_v39  ;;  %930 = vmatmul.msk.f32.vlgmr.msra.gmra.mxu3 %vm450_vm1, %v649_v38 }
 0x3d2   : > { %927 = vmatmul.msk.f32.vlgmr.msrb.gmra.mxu1 %vm450_vm1, %v568_v41 }
 0x3d3   : > { %751 = vmatpush.msra.mxu1 %v731_v40 }
 0x3da   : > { %933 = vmatmul.msk.f32.vlgmr.msra.gmra.mxu1 %vm450_vm1, %v729_v43 }
 0x3e1   : > { %v517_v44 = vpop.f32.mrf.mxu3 }
 0x3e2   : > { %520 = vst.msk [vmem:[#allocation2] sm:$0xff] %vm450_vm1, %v517_v44 }
 0x44f   : > { %v593_v45 = vpop.f32.mrf.mxu1 }
 0x450   : > { %597 = vrot.lane.b32.xlu0 %v593_v45, %s1264_s24 }
 0x454   : > { %v673_v46 = vpop.f32.mrf.mxu3 }
 0x457   : > { %v753_v47 = vpop.f32.mrf.mxu1 }
 0x458   : > { %677 = vrot.lane.b32.xlu0 %v673_v46, %s1265_s27  ;;  %757 = vrot.lane.b32.xlu1 %v753_v47, %s1266_s10 }
 0x4c2   : > { %v598_v48 = vpop.permute.xlu0 %597 }
 0x4c3   : > { %601 = vst.msk [vmem:[#allocation2] sm:$0xff] %vm600_vm6, %v598_v48 }
 0x4ca   : > { %v678_v49 = vpop.permute.xlu0 %677  ;;  %v758_v50 = vpop.permute.xlu1 %757 }
 0x4cb   : > { %681 = vst.msk [vmem:[#allocation2] sm:$0xff] %vm680_vm7, %v678_v49 }
 0x4cc   : > { %761 = vst.msk [vmem:[#allocation2] sm:$0xff] %vm760_vm8, %v758_v50 }
 0x4d3   : > { %v762_v51 = vld [vmem:[#allocation2] sm:$0xff] }
 0x4d4   : > { %763 = vst.msk [vmem:[%s333_s11] sm:$0xff] %vm343_vm0, %v762_v51 }
 0x4d5   : > { %1207 = shalt.err (!%p1204_p8)
}
 0x4d6   : > { %948 = dma.vmem_to_hbm [thread:$0]  (%p1336_p6), %s778_s8, 128, %s780_s16, %s765_s25  }
 0x4d7 PF: > { %s1579_s6 = sld [smem:[#allocation16_spill]]  ;;  %s791_s15 = sand.u32 1, %s1242_s18  }
 0x4d8   : > { %s792_s26 = scalar_lea.sflag [#allocation5], %s791_s15 }
 0x4dd   : > { %p1580_p7 = scmp.ge.s32.totalorder %s1579_s6, 2 }
 0x4df   : > { %p965_p12 = pnand %p1580_p7, %p1345_p10 }
 0x4e1   : > { %p966_p0 = pneg %p965_p12 }
 0x4e3   : > { %1237 = dma.done.wait (%p966_p0), %s792_s26, 128  }
 0x4e4   : > { %1239 = vsyncadd (%p966_p0), %s792_s26, 4294967168  ;;  %s1581_s21 = sld [smem:[#allocation17_spill]]  ;;  %s1583_s18 = smov %s1246_s19 }
 0x4e5   : > { %s1582_s24 = sld [smem:[#allocation18_spill]]  ;;  %s1584_s19 = smov %s1250_s20 }
 0x4ea   : > { %p22_p4 = scmp.ge.s32.totalorder %s1581_s21, 4  }
 0x4eb   : > { %s1585_s20 = smov %s1582_s24 }
 0x4ec   :  { %24 = sbr.rel (!%p22_p4) target bundleno = 11 (0xb), region = 113 }
 0x4f1   :  { %798 = vsyncpa [#allocation4], 1 }
 0x4f2   :  { %800 = vsyncpa [#allocation4 + $0x1], 1 }
 0x4f3   :  { %801 = vsyncpa [#allocation7], 1 }
 0x4f4   :  { %803 = vsyncpa [#allocation7 + $0x1], 1 }
 0x4f5   :  { %804 = vsyncpa [#allocation10], 1 }
 0x4f6   :  { %805 = vsyncpa [#allocation5], 1 }
 0x4f7   :  { %807 = vsyncpa [#allocation5 + $0x1], 1 }

</bundles_post_ra>
